<compile_context>
chip_gen: v7x
topology: tpu7x:2x2x1
jax: 0.10.0
libtpu: 0.0.40
codegen_flags: <defaults>
</compile_context>

<pallas_src>
import math

import jax
import jax.numpy as jnp
from jax.experimental import pallas as pl
from jax.experimental.pallas import tpu as pltpu

_CONV_PAD = 8  # sublane-aligned offset for the conv zero-padding (>= d_conv - 1)


# ------------------------------------------------------------------------- kernel
def fused_net_kernel(
    x_ref,        # (B, L, in_dim)                       f32   (constant block)
    w_in_ref,     # (in_dim, d_model)                    bf16  (constant block)
    b_in_ref,     # (1, d_model)                         f32   (constant block)
    normw_ref,    # (1, 1, d_model)                      f32   (layer block)
    w_ip_ref,     # (1, d_model, 2*d_inner)              bf16  [x-half | z-half]
    convw_ref,    # (1, d_conv, d_inner)                 f32
    convb_ref,    # (1, 1, d_inner)                      f32
    w_xp_ref,     # (1, d_inner, d_inner+2*d_state)      bf16  [dt_eff | B | C]
    dtb_ref,      # (1, 1, d_inner)                      f32
    alogt_ref,    # (1, d_state, d_inner)                f32   (A_log transposed)
    dvec_ref,     # (1, 1, d_inner)                      f32
    w_op_ref,     # (1, d_inner, d_model)                bf16  out_proj
    w_out_ref,    # (d_model, out_dim)                   bf16  (constant block)
    b_out_ref,    # (1, out_dim)                         f32   (constant block)
    o_ref,        # (B, L, out_dim)                      f32   (constant block, written at last layer)
    # scratch (persists across the layer grid)
    h_s,          # (B*L, d_model)            f32  residual stream carried across layers
    xpad_s,       # (B, PAD+L, d_inner)       f32  conv zero-padded staging (pad rows stay 0)
    dA_s,         # (L, d_state, B*d_inner)   f32  exp(delta_t * A), batch folded on lanes
    hall_s,       # (L, d_state, B*d_inner)   f32  delta*B*x before the scan, states after
):
    layer = pl.program_id(0)
    n_layers = pl.num_programs(0)
    B, L, in_dim = x_ref.shape
    d_conv, d_inner = convw_ref.shape[1], convw_ref.shape[2]
    d_state = alogt_ref.shape[1]
    out_dim = o_ref.shape[2]
    BL = B * L
    PAD = xpad_s.shape[1] - L
    f32 = jnp.float32

    def mm(a, w_bf16):
        # bf16 x bf16 on the MXU, f32 accumulation.
        return jnp.dot(a.astype(jnp.bfloat16), w_bf16, preferred_element_type=f32)

    # ---------------- first grid step: input Linear + one-time scratch init ------
    @pl.when(layer == 0)
    def _():
        x2 = x_ref[...].reshape(BL, in_dim)
        h_s[...] = mm(x2, w_in_ref[...]) + b_in_ref[...]          # (BL, d_model)
        # Zero the conv staging buffer ONCE; only rows [PAD-d_conv+1, PAD) need to be
        # zero and they are never written again (data rows [PAD, PAD+L) are fully
        # overwritten every layer).
        xpad_s[...] = jnp.zeros(xpad_s.shape, f32)

    h = h_s[...]                                                  # (BL, d_model)

    # ---------------- RMSNorm -----------------------------------------------------
    ms = jnp.mean(h * h, axis=-1, keepdims=True)
    xn = h * jax.lax.rsqrt(ms + 1e-5) * normw_ref[0]              # (BL, d_model)

    # ---------------- fused in_proj -> [x | z] (single lane-dense matmul) ---------
    xz = mm(xn, w_ip_ref[0])                                      # (BL, 2*d_inner)
    xin = xz[:, :d_inner]                                         # (BL, d_inner)
    z = xz[:, d_inner:]                                           # (BL, d_inner)

    # ---------------- causal depthwise conv1d -------------------------------------
    # Sublane-aligned store of the new data rows; the zero pad rows above them give
    # the causal left-padding for free (no rolls / iota masks -> XLU stays free).
    xpad_s[:, PAD:PAD + L, :] = xin.reshape(B, L, d_inner)
    convw = convw_ref[0]                                          # (d_conv, d_inner)
    s0 = PAD - d_conv + 1
    acc = xpad_s[:, s0:s0 + L, :] * convw[0:1, :][None, :, :]
    for k in range(1, d_conv):                                    # static unroll (d_conv=4)
        acc = acc + xpad_s[:, s0 + k:s0 + k + L, :] * convw[k:k + 1, :][None, :, :]
    xc = jax.nn.silu(acc.reshape(BL, d_inner) + convb_ref[0])     # (BL, d_inner)

    # ---------------- fused x_proj -> [delta_pre | B | C] (dt_proj folded in) -----
    proj = mm(xc, w_xp_ref[0])                                    # (BL, d_inner+2*d_state)
    delta = jax.nn.softplus(proj[:, :d_inner] + dtb_ref[0])       # (BL, d_inner) f32
    bmat = proj[:, d_inner:d_inner + d_state]                     # (BL, d_state)
    cmat = proj[:, d_inner + d_state:]                            # (BL, d_state)

    # ---------------- build scan inputs, batch folded onto the lane axis ----------
    #   dA_s[t, s, b*d_inner+i]   = exp(delta[b,t,i] * A[s,i])
    #   hall_s[t, s, b*d_inner+i] = delta[b,t,i] * B[b,t,s] * x[b,t,i]   (pre-scan)
    A_t = -jnp.exp(alogt_ref[0])                                  # (d_state, d_inner)
    dx = delta * xc                                               # (BL, d_inner)
    dA_parts, dBx_parts = [], []
    for b in range(B):                                            # static
        rows = slice(b * L, (b + 1) * L)
        dA_parts.append(jnp.exp(delta[rows][:, None, :] * A_t[None, :, :]))
        dBx_parts.append(dx[rows][:, None, :] * bmat[rows][:, :, None])
    dA_s[...] = jnp.concatenate(dA_parts, axis=2)                 # (L, d_state, B*d_inner)
    hall_s[...] = jnp.concatenate(dBx_parts, axis=2)              # (L, d_state, B*d_inner)

    # ---------------- selective scan (in place, full-lane vregs) -------------------
    # One full-width FMA + one contiguous row store per time step; dBx buffer is
    # reused as the state buffer (review: drop one scratch tier).
    unroll = True if L <= 16 else 8                               # size-aware unroll

    def scan_body(t, hprev):
        hnew = dA_s[t] * hprev + hall_s[t]                        # (d_state, B*d_inner)
        hall_s[t] = hnew
        return hnew

    jax.lax.fori_loop(0, L, scan_body,
                      jnp.zeros((d_state, B * d_inner), f32), unroll=unroll)

    # ---------------- y_t = <h_t, C_t> + D*x_t  (vectorized sublane reduce) --------
    ys = []
    for b in range(B):                                            # static
        rows = slice(b * L, (b + 1) * L)
        lanes = slice(b * d_inner, (b + 1) * d_inner)
        ys.append(jnp.sum(hall_s[:, :, lanes] * cmat[rows][:, :, None], axis=1))
    y = jnp.concatenate(ys, axis=0) + xc * dvec_ref[0]            # (BL, d_inner)

    # ---------------- gate + out_proj + residual (carried in VMEM scratch) ---------
    h_s[...] = mm(y * jax.nn.silu(z), w_op_ref[0]) + h            # (BL, d_model)

    # ---------------- last grid step: output Linear + Tanh -------------------------
    @pl.when(layer == n_layers - 1)
    def _():
        o = jnp.tanh(mm(h_s[...], w_out_ref[...]) + b_out_ref[...])   # (BL, out_dim)
        o_ref[...] = o.reshape(B, L, out_dim)


# ------------------------------------------------------------------------- wrapper
def net_forward(x, p):
    """x: (B, L, in_dim) f32 -> flat (B*L*out_dim,) f32 (matches torch x.flatten())."""
    B, L, in_dim = x.shape
    out_dim = p["w_out"].shape[1]
    n_layers, d_conv, d_inner = p["conv_w"].shape
    d_state = p["a_log_t"].shape[1]
    assert d_conv - 1 <= _CONV_PAD

    def const_spec(shape):
        zeros = (0,) * len(shape)
        return pl.BlockSpec(shape, lambda l, _z=zeros: _z)

    def layer_spec(full_shape):
        # One layer's weights per grid step -> Pallas prefetches layer l+1 behind layer l.
        nrest = len(full_shape) - 1
        return pl.BlockSpec((1,) + tuple(full_shape[1:]),
                            lambda l, _n=nrest: (l,) + (0,) * _n)

    args = (
        x,
        p["w_in"], p["b_in"],
        p["norm_w"], p["w_inproj"], p["conv_w"], p["conv_b"],
        p["w_xproj"], p["dt_b"], p["a_log_t"], p["d"], p["w_outproj"],
        p["w_out"], p["b_out"],
    )
    in_specs = [
        const_spec(x.shape),
        const_spec(p["w_in"].shape), const_spec(p["b_in"].shape),
        layer_spec(p["norm_w"].shape), layer_spec(p["w_inproj"].shape),
        layer_spec(p["conv_w"].shape), layer_spec(p["conv_b"].shape),
        layer_spec(p["w_xproj"].shape), layer_spec(p["dt_b"].shape),
        layer_spec(p["a_log_t"].shape), layer_spec(p["d"].shape),
        layer_spec(p["w_outproj"].shape),
        const_spec(p["w_out"].shape), const_spec(p["b_out"].shape),
    ]

    out = pl.pallas_call(
        fused_net_kernel,
        out_shape=jax.ShapeDtypeStruct((B, L, out_dim), jnp.float32),
        grid=(n_layers,),
        in_specs=in_specs,
        out_specs=pl.BlockSpec((B, L, out_dim), lambda l: (0, 0, 0)),
        scratch_shapes=[
            pltpu.VMEM((B * L, p["w_in"].shape[1]), jnp.float32),      # residual stream
            pltpu.VMEM((B, _CONV_PAD + L, d_inner), jnp.float32),      # conv padded staging
            pltpu.VMEM((L, d_state, B * d_inner), jnp.float32),        # dA
            pltpu.VMEM((L, d_state, B * d_inner), jnp.float32),        # dBx / scan states (in place)
        ],
        compiler_params=pltpu.CompilerParams(
            dimension_semantics=("arbitrary",),          # layer axis is a sequential carry
            vmem_limit_bytes=32 * 1024 * 1024,           # explicit budget, safe on v5e/v6e/v7x
        ),
    )(*args)
    return out.reshape(-1)


# ------------------------------------------------------------------------- reference (pure JAX, f32)
def net_reference(x, p):
    f32 = jnp.float32
    n_layers, d_conv, d_inner = p["conv_w"].shape
    d_state = p["a_log_t"].shape[1]
    B, L, _ = x.shape

    h = jnp.einsum("bli,io->blo", x, p["w_in"].astype(f32)) + p["b_in"][0]
    for l in range(n_layers):
        ms = jnp.mean(h * h, axis=-1, keepdims=True)
        xn = h * jax.lax.rsqrt(ms + 1e-5) * p["norm_w"][l, 0]
        xz = jnp.einsum("bld,de->ble", xn, p["w_inproj"][l].astype(f32))
        xin, z = xz[..., :d_inner], xz[..., d_inner:]
        xpad = jnp.pad(xin, ((0, 0), (d_conv - 1, 0), (0, 0)))
        acc = sum(xpad[:, k:k + L, :] * p["conv_w"][l, k] for k in range(d_conv))
        xc = jax.nn.silu(acc + p["conv_b"][l, 0])
        proj = jnp.einsum("bld,de->ble", xc, p["w_xproj"][l].astype(f32))
        delta = jax.nn.softplus(proj[..., :d_inner] + p["dt_b"][l, 0])
        Bm = proj[..., d_inner:d_inner + d_state]
        Cm = proj[..., d_inner + d_state:]
        A = -jnp.exp(p["a_log_t"][l])                                   # (d_state, d_inner)
        dA = jnp.exp(delta[:, :, None, :] * A[None, None])              # (B, L, S, I)
        dBx = (delta * xc)[:, :, None, :] * Bm[..., None]               # (B, L, S, I)

        def step(hprev, inp):
            dA_t, dBx_t = inp
            hnew = dA_t * hprev + dBx_t
            return hnew, hnew

        h0 = jnp.zeros((B, d_state, d_inner), f32)
        _, hall = jax.lax.scan(step, h0, (dA.transpose(1, 0, 2, 3), dBx.transpose(1, 0, 2, 3)))
        hall = hall.transpose(1, 0, 2, 3)                               # (B, L, S, I)
        y = jnp.einsum("blsi,bls->bli", hall, Cm) + xc * p["d"][l, 0]
        h = jnp.einsum("bli,io->blo", y * jax.nn.silu(z), p["w_outproj"][l].astype(f32)) + h
    o = jnp.tanh(jnp.einsum("bld,do->blo", h, p["w_out"].astype(f32)) + p["b_out"][0])
    return o.reshape(-1)


# ------------------------------------------------------------------------- params
def init_params(key, in_dim, hidden, out_dim, n_layers,
                d_state=16, expand=2, d_conv=4):
    d_model = hidden
    d_inner = expand * d_model
    dt_rank = math.ceil(d_model / 16)
    bf16 = jnp.bfloat16

    def dense(k, fan_in, fan_out):
        return (jax.random.normal(k, (fan_in, fan_out), jnp.float32)
                / jnp.sqrt(jnp.float32(fan_in)))

    keys = jax.random.split(key, 4 + n_layers)

    norm_w, w_inproj, conv_w, conv_b = [], [], [], []
    w_xproj, dt_bias, a_log_t, dvec, w_outproj = [], [], [], [], []
    for i in range(n_layers):
        ks = jax.random.split(keys[4 + i], 9)
        wx = dense(ks[0], d_model, d_inner)
        wz = dense(ks[1], d_model, d_inner)
        cw = (jax.random.normal(ks[2], (d_conv, d_inner), jnp.float32)
              / jnp.sqrt(jnp.float32(d_conv)))
        w_delta = dense(ks[3], d_inner, dt_rank)
        w_b = dense(ks[4], d_inner, d_state)
        w_c = dense(ks[5], d_inner, d_state)
        dtw = dense(ks[6], dt_rank, d_inner)
        dtb = 0.1 * jax.random.normal(ks[7], (1, d_inner), jnp.float32)
        wo = dense(ks[8], d_inner, d_model)
        a_log = jnp.tile(
            jnp.log(jnp.arange(1, d_state + 1, dtype=jnp.float32))[None, :],
            (d_inner, 1))                                            # (d_inner, d_state)

        norm_w.append(jnp.ones((1, d_model), jnp.float32))
        w_inproj.append(jnp.concatenate([wx, wz], axis=1))           # (d_model, 2*d_inner)
        conv_w.append(cw)
        conv_b.append(jnp.zeros((1, d_inner), jnp.float32))
        # fold dt_proj into x_proj delta columns: delta_pre = x @ (w_delta @ dtw) + dt_b
        dt_eff = w_delta @ dtw                                       # (d_inner, d_inner)
        w_xproj.append(jnp.concatenate([dt_eff, w_b, w_c], axis=1))  # (d_inner, d_inner+2*d_state)
        dt_bias.append(dtb)
        a_log_t.append(a_log.T)                                      # (d_state, d_inner)
        dvec.append(jnp.ones((1, d_inner), jnp.float32))
        w_outproj.append(wo)

    # TODO(synk): dt_proj bias init does not follow Mamba's softplus-inverse scheme;
    # only relevant when matching a trained PyTorch checkpoint numerically.
    return dict(
        w_in=dense(keys[0], in_dim, d_model).astype(bf16),
        b_in=0.01 * jax.random.normal(keys[1], (1, d_model), jnp.float32),
        w_out=dense(keys[2], d_model, out_dim).astype(bf16),
        b_out=0.01 * jax.random.normal(keys[3], (1, out_dim), jnp.float32),
        norm_w=jnp.stack(norm_w),
        w_inproj=jnp.stack(w_inproj).astype(bf16),
        conv_w=jnp.stack(conv_w),
        conv_b=jnp.stack(conv_b),
        w_xproj=jnp.stack(w_xproj).astype(bf16),
        dt_b=jnp.stack(dt_bias),
        a_log_t=jnp.stack(a_log_t),
        d=jnp.stack(dvec),
        w_outproj=jnp.stack(w_outproj).astype(bf16),
    )


# ------------------------------------------------------------------------- main
if __name__ == "__main__":
    # Stand-ins for argparse: args.hidden = 32, args.layer = 2
    B, L = 2, 8
    IN_DIM, HIDDEN, OUT_DIM, N_LAYERS = 4, 32, 4, 2

    root = jax.random.PRNGKey(0)
    k_params, k_x = jax.random.split(root)
    params = init_params(k_params, IN_DIM, HIDDEN, OUT_DIM, N_LAYERS)
    x = jax.random.normal(k_x, (B, L, IN_DIM), jnp.float32)

    fwd = jax.jit(net_forward)
    y = fwd(x, params)
    jax.block_until_ready(y)
    assert y.shape == (B * L * OUT_DIM,)
    assert bool(jnp.all(jnp.isfinite(y)))

    # Correctness check against a plain-JAX f32 reference (bf16 MXU inputs in the
    # kernel -> loose tolerance).
    y_ref = net_reference(x, params)
    max_diff = float(jnp.max(jnp.abs(y - y_ref)))
    assert max_diff < 5e-2, f"mismatch vs reference: {max_diff}"

    print("KERNEL_OK")
</pallas_src>

<mosaic_0001>
module attributes {stable_mosaic.version = 11 : i64} {
  func.func @fused_net_kernel(%arg0: i32, %arg1: memref<2x8x4xf32, #tpu.memory_space<vmem>>, %arg2: memref<4x32xbf16, #tpu.memory_space<vmem>>, %arg3: memref<1x32xf32, #tpu.memory_space<vmem>>, %arg4: memref<1x1x32xf32, #tpu.memory_space<vmem>>, %arg5: memref<1x32x128xbf16, #tpu.memory_space<vmem>>, %arg6: memref<1x4x64xf32, #tpu.memory_space<vmem>>, %arg7: memref<1x1x64xf32, #tpu.memory_space<vmem>>, %arg8: memref<1x64x96xbf16, #tpu.memory_space<vmem>>, %arg9: memref<1x1x64xf32, #tpu.memory_space<vmem>>, %arg10: memref<1x16x64xf32, #tpu.memory_space<vmem>>, %arg11: memref<1x1x64xf32, #tpu.memory_space<vmem>>, %arg12: memref<1x64x32xbf16, #tpu.memory_space<vmem>>, %arg13: memref<32x4xbf16, #tpu.memory_space<vmem>>, %arg14: memref<1x4xf32, #tpu.memory_space<vmem>>, %arg15: memref<2x8x4xf32, #tpu.memory_space<vmem>>, %arg16: memref<16x32xf32, #tpu.memory_space<vmem>>, %arg17: memref<2x16x64xf32, #tpu.memory_space<vmem>>, %arg18: memref<8x16x128xf32, #tpu.memory_space<vmem>>, %arg19: memref<8x16x128xf32, #tpu.memory_space<vmem>>) attributes {dimension_semantics = [#tpu.dimension_semantics<arbitrary>], iteration_bounds = array<i64: 2>, scalar_prefetch = 0 : i64, scratch_operands = 4 : i64, tpu.core_type = #tpu.core_type<tc>, window_params = [{pipeline_mode = #tpu.pipeline_mode<synchronous>, transform_indices = @transform_0, window_bounds = array<i64: 2, 8, 4>}, {pipeline_mode = #tpu.pipeline_mode<synchronous>, transform_indices = @transform_1, window_bounds = array<i64: 4, 32>}, {pipeline_mode = #tpu.pipeline_mode<synchronous>, transform_indices = @transform_2, window_bounds = array<i64: 1, 32>}, {transform_indices = @transform_3, window_bounds = array<i64: 1, 1, 32>}, {transform_indices = @transform_4, window_bounds = array<i64: 1, 32, 128>}, {transform_indices = @transform_5, window_bounds = array<i64: 1, 4, 64>}, {transform_indices = @transform_6, window_bounds = array<i64: 1, 1, 64>}, {transform_indices = @transform_7, window_bounds = array<i64: 1, 64, 96>}, {transform_indices = @transform_8, window_bounds = array<i64: 1, 1, 64>}, {transform_indices = @transform_9, window_bounds = array<i64: 1, 16, 64>}, {transform_indices = @transform_10, window_bounds = array<i64: 1, 1, 64>}, {transform_indices = @transform_11, window_bounds = array<i64: 1, 64, 32>}, {pipeline_mode = #tpu.pipeline_mode<synchronous>, transform_indices = @transform_12, window_bounds = array<i64: 32, 4>}, {pipeline_mode = #tpu.pipeline_mode<synchronous>, transform_indices = @transform_13, window_bounds = array<i64: 1, 4>}, {pipeline_mode = #tpu.pipeline_mode<synchronous>, transform_indices = @transform_14, window_bounds = array<i64: 2, 8, 4>}]} {
    %c0_i32 = arith.constant 0 : i32
    %0 = arith.cmpi eq, %arg0, %c0_i32 : i32
    %1 = arith.extui %0 : i1 to i32
    %c0_i32_0 = arith.constant 0 : i32
    %2 = arith.cmpi ne, %1, %c0_i32_0 : i32
    scf.if %2 {
      %c0_117 = arith.constant 0 : index
      %c0_118 = arith.constant 0 : index
      %c0_119 = arith.constant 0 : index
      %256 = vector.load %arg1[%c0_117, %c0_118, %c0_119] : memref<2x8x4xf32, #tpu.memory_space<vmem>>, vector<2x8x4xf32>
      %257 = vector.shape_cast %256 : vector<2x8x4xf32> to vector<16x4xf32>
      %c0_120 = arith.constant 0 : index
      %c0_121 = arith.constant 0 : index
      %258 = vector.load %arg2[%c0_120, %c0_121] : memref<4x32xbf16, #tpu.memory_space<vmem>>, vector<4x32xbf16>
      %259 = arith.truncf %257 : vector<16x4xf32> to vector<16x4xbf16>
      %cst_122 = arith.constant dense<0.000000e+00> : vector<16x32xf32>
      %260 = tpu.matmul %259, %258, %cst_122 {dimension_numbers = #tpu.dot_dimension_numbers<[1], [0], [0], [1], [0, 0, 1, 1], [], []>} : vector<16x4xbf16>, vector<4x32xbf16>, vector<16x32xf32> -> vector<16x32xf32>
      %c0_123 = arith.constant 0 : index
      %c0_124 = arith.constant 0 : index
      %261 = vector.load %arg3[%c0_123, %c0_124] : memref<1x32xf32, #tpu.memory_space<vmem>>, vector<1x32xf32>
      %262 = vector.broadcast %261 : vector<1x32xf32> to vector<16x32xf32>
      %263 = arith.addf %260, %262 : vector<16x32xf32>
      %c0_125 = arith.constant 0 : index
      %c0_126 = arith.constant 0 : index
      %264 = vector.load %arg16[%c0_125, %c0_126] : memref<16x32xf32, #tpu.memory_space<vmem>>, vector<16x32xf32>
      tpu.vector_store %arg16[%c0_125, %c0_126], %263 {strides = array<i32>} : memref<16x32xf32, #tpu.memory_space<vmem>>, vector<16x32xf32>,
      %cst_127 = arith.constant 0.000000e+00 : f32
      %265 = vector.broadcast %cst_127 : f32 to vector<2x16x64xf32>
      %c0_128 = arith.constant 0 : index
      %c0_129 = arith.constant 0 : index
      %c0_130 = arith.constant 0 : index
      %266 = vector.load %arg17[%c0_128, %c0_129, %c0_130] : memref<2x16x64xf32, #tpu.memory_space<vmem>>, vector<2x16x64xf32>
      tpu.vector_store %arg17[%c0_128, %c0_129, %c0_130], %265 {strides = array<i32>} : memref<2x16x64xf32, #tpu.memory_space<vmem>>, vector<2x16x64xf32>,
    } else {
    }
    %c0 = arith.constant 0 : index
    %c0_1 = arith.constant 0 : index
    %3 = vector.load %arg16[%c0, %c0_1] : memref<16x32xf32, #tpu.memory_space<vmem>>, vector<16x32xf32>
    %4 = arith.mulf %3, %3 : vector<16x32xf32>
    %cst = arith.constant dense<0.000000e+00> : vector<16xf32>
    %5 = vector.multi_reduction <add>, %4, %cst [1] : vector<16x32xf32> to vector<16xf32>
    %6 = vector.shape_cast %5 : vector<16xf32> to vector<16x1xf32>
    %cst_2 = arith.constant 3.200000e+01 : f32
    %7 = vector.broadcast %cst_2 : f32 to vector<16x1xf32>
    %8 = arith.divf %6, %7 : vector<16x1xf32>
    %cst_3 = arith.constant 9.99999974E-6 : f32
    %9 = vector.broadcast %cst_3 : f32 to vector<16x1xf32>
    %10 = arith.addf %8, %9 : vector<16x1xf32>
    %11 = math.rsqrt %10 : vector<16x1xf32>
    %12 = vector.broadcast %11 : vector<16x1xf32> to vector<16x32xf32>
    %13 = arith.mulf %3, %12 : vector<16x32xf32>
    %c0_4 = arith.constant 0 : index
    %c0_5 = arith.constant 0 : index
    %c0_6 = arith.constant 0 : index
    %14 = vector.load %arg4[%c0_4, %c0_5, %c0_6] : memref<1x1x32xf32, #tpu.memory_space<vmem>>, vector<1x1x32xf32>
    %15 = vector.shape_cast %14 : vector<1x1x32xf32> to vector<1x32xf32>
    %16 = vector.broadcast %15 : vector<1x32xf32> to vector<16x32xf32>
    %17 = arith.mulf %13, %16 : vector<16x32xf32>
    %c0_7 = arith.constant 0 : index
    %c0_8 = arith.constant 0 : index
    %c0_9 = arith.constant 0 : index
    %18 = vector.load %arg5[%c0_7, %c0_8, %c0_9] : memref<1x32x128xbf16, #tpu.memory_space<vmem>>, vector<1x32x128xbf16>
    %19 = vector.shape_cast %18 : vector<1x32x128xbf16> to vector<32x128xbf16>
    %20 = arith.truncf %17 : vector<16x32xf32> to vector<16x32xbf16>
    %cst_10 = arith.constant dense<0.000000e+00> : vector<16x128xf32>
    %21 = tpu.matmul %20, %19, %cst_10 {dimension_numbers = #tpu.dot_dimension_numbers<[1], [0], [0], [1], [0, 0, 1, 1], [], []>} : vector<16x32xbf16>, vector<32x128xbf16>, vector<16x128xf32> -> vector<16x128xf32>
    %22 = vector.extract_strided_slice %21 {offsets = [0, 0], sizes = [16, 64], strides = [1, 1]} : vector<16x128xf32> to vector<16x64xf32>
    %23 = vector.extract_strided_slice %21 {offsets = [0, 64], sizes = [16, 64], strides = [1, 1]} : vector<16x128xf32> to vector<16x64xf32>
    %24 = vector.shape_cast %22 : vector<16x64xf32> to vector<2x8x64xf32>
    %c0_11 = arith.constant 0 : index
    %c8 = arith.constant 8 : index
    %c0_12 = arith.constant 0 : index
    %25 = vector.load %arg17[%c0_11, %c8, %c0_12] : memref<2x16x64xf32, #tpu.memory_space<vmem>>, vector<2x8x64xf32>
    tpu.vector_store %arg17[%c0_11, %c8, %c0_12], %24 {strides = array<i32>} : memref<2x16x64xf32, #tpu.memory_space<vmem>>, vector<2x8x64xf32>,
    %c0_13 = arith.constant 0 : index
    %c0_14 = arith.constant 0 : index
    %c0_15 = arith.constant 0 : index
    %26 = vector.load %arg6[%c0_13, %c0_14, %c0_15] : memref<1x4x64xf32, #tpu.memory_space<vmem>>, vector<1x4x64xf32>
    %27 = vector.shape_cast %26 : vector<1x4x64xf32> to vector<4x64xf32>
    %c0_16 = arith.constant 0 : index
    %c5 = arith.constant 5 : index
    %c0_17 = arith.constant 0 : index
    %28 = vector.load %arg17[%c0_16, %c5, %c0_17] : memref<2x16x64xf32, #tpu.memory_space<vmem>>, vector<2x8x64xf32>
    %29 = vector.extract_strided_slice %27 {offsets = [0, 0], sizes = [1, 64], strides = [1, 1]} : vector<4x64xf32> to vector<1x64xf32>
    %30 = vector.shape_cast %29 : vector<1x64xf32> to vector<1x1x64xf32>
    %31 = vector.broadcast %30 : vector<1x1x64xf32> to vector<2x8x64xf32>
    %32 = arith.mulf %28, %31 : vector<2x8x64xf32>
    %c0_18 = arith.constant 0 : index
    %c6 = arith.constant 6 : index
    %c0_19 = arith.constant 0 : index
    %33 = vector.load %arg17[%c0_18, %c6, %c0_19] : memref<2x16x64xf32, #tpu.memory_space<vmem>>, vector<2x8x64xf32>
    %34 = vector.extract_strided_slice %27 {offsets = [1, 0], sizes = [1, 64], strides = [1, 1]} : vector<4x64xf32> to vector<1x64xf32>
    %35 = vector.shape_cast %34 : vector<1x64xf32> to vector<1x1x64xf32>
    %36 = vector.broadcast %35 : vector<1x1x64xf32> to vector<2x8x64xf32>
    %37 = arith.mulf %33, %36 : vector<2x8x64xf32>
    %38 = arith.addf %32, %37 : vector<2x8x64xf32>
    %c0_20 = arith.constant 0 : index
    %c7 = arith.constant 7 : index
    %c0_21 = arith.constant 0 : index
    %39 = vector.load %arg17[%c0_20, %c7, %c0_21] : memref<2x16x64xf32, #tpu.memory_space<vmem>>, vector<2x8x64xf32>
    %40 = vector.extract_strided_slice %27 {offsets = [2, 0], sizes = [1, 64], strides = [1, 1]} : vector<4x64xf32> to vector<1x64xf32>
    %41 = vector.shape_cast %40 : vector<1x64xf32> to vector<1x1x64xf32>
    %42 = vector.broadcast %41 : vector<1x1x64xf32> to vector<2x8x64xf32>
    %43 = arith.mulf %39, %42 : vector<2x8x64xf32>
    %44 = arith.addf %38, %43 : vector<2x8x64xf32>
    %c0_22 = arith.constant 0 : index
    %c8_23 = arith.constant 8 : index
    %c0_24 = arith.constant 0 : index
    %45 = vector.load %arg17[%c0_22, %c8_23, %c0_24] : memref<2x16x64xf32, #tpu.memory_space<vmem>>, vector<2x8x64xf32>
    %46 = vector.extract_strided_slice %27 {offsets = [3, 0], sizes = [1, 64], strides = [1, 1]} : vector<4x64xf32> to vector<1x64xf32>
    %47 = vector.shape_cast %46 : vector<1x64xf32> to vector<1x1x64xf32>
    %48 = vector.broadcast %47 : vector<1x1x64xf32> to vector<2x8x64xf32>
    %49 = arith.mulf %45, %48 : vector<2x8x64xf32>
    %50 = arith.addf %44, %49 : vector<2x8x64xf32>
    %51 = vector.shape_cast %50 : vector<2x8x64xf32> to vector<16x64xf32>
    %c0_25 = arith.constant 0 : index
    %c0_26 = arith.constant 0 : index
    %c0_27 = arith.constant 0 : index
    %52 = vector.load %arg7[%c0_25, %c0_26, %c0_27] : memref<1x1x64xf32, #tpu.memory_space<vmem>>, vector<1x1x64xf32>
    %53 = vector.shape_cast %52 : vector<1x1x64xf32> to vector<1x64xf32>
    %54 = vector.broadcast %53 : vector<1x64xf32> to vector<16x64xf32>
    %55 = arith.addf %51, %54 : vector<16x64xf32>
    %56 = arith.negf %55 : vector<16x64xf32>
    %57 = math.exp %56 : vector<16x64xf32>
    %cst_28 = arith.constant 1.000000e+00 : f32
    %58 = vector.broadcast %cst_28 : f32 to vector<16x64xf32>
    %59 = arith.addf %58, %57 : vector<16x64xf32>
    %60 = arith.divf %58, %59 : vector<16x64xf32>
    %61 = arith.mulf %55, %60 : vector<16x64xf32>
    %c0_29 = arith.constant 0 : index
    %c0_30 = arith.constant 0 : index
    %c0_31 = arith.constant 0 : index
    %62 = vector.load %arg8[%c0_29, %c0_30, %c0_31] : memref<1x64x96xbf16, #tpu.memory_space<vmem>>, vector<1x64x96xbf16>
    %63 = vector.shape_cast %62 : vector<1x64x96xbf16> to vector<64x96xbf16>
    %64 = arith.truncf %61 : vector<16x64xf32> to vector<16x64xbf16>
    %cst_32 = arith.constant dense<0.000000e+00> : vector<16x96xf32>
    %65 = tpu.matmul %64, %63, %cst_32 {dimension_numbers = #tpu.dot_dimension_numbers<[1], [0], [0], [1], [0, 0, 1, 1], [], []>} : vector<16x64xbf16>, vector<64x96xbf16>, vector<16x96xf32> -> vector<16x96xf32>
    %66 = vector.extract_strided_slice %65 {offsets = [0, 0], sizes = [16, 64], strides = [1, 1]} : vector<16x96xf32> to vector<16x64xf32>
    %c0_33 = arith.constant 0 : index
    %c0_34 = arith.constant 0 : index
    %c0_35 = arith.constant 0 : index
    %67 = vector.load %arg9[%c0_33, %c0_34, %c0_35] : memref<1x1x64xf32, #tpu.memory_space<vmem>>, vector<1x1x64xf32>
    %68 = vector.shape_cast %67 : vector<1x1x64xf32> to vector<1x64xf32>
    %69 = vector.broadcast %68 : vector<1x64xf32> to vector<16x64xf32>
    %70 = arith.addf %66, %69 : vector<16x64xf32>
    %cst_36 = arith.constant 0.000000e+00 : f32
    %71 = vector.broadcast %cst_36 : f32 to vector<16x64xf32>
    %72 = arith.maximumf %70, %71 : vector<16x64xf32>
    %73 = vector.broadcast %cst_36 : f32 to vector<16x64xf32>
    %74 = arith.subf %70, %73 : vector<16x64xf32>
    %75 = arith.cmpf one, %74, %74 : vector<16x64xf32>
    %76 = vector.broadcast %cst_36 : f32 to vector<16x64xf32>
    %77 = arith.addf %70, %76 : vector<16x64xf32>
    %78 = math.absf %74 : vector<16x64xf32>
    %cst_37 = arith.constant 0.000000e+00 : f32
    %79 = vector.broadcast %cst_37 : f32 to vector<16x64xf32>
    %80 = arith.subf %79, %78 : vector<16x64xf32>
    %81 = math.exp %80 : vector<16x64xf32>
    %82 = math.log1p %81 : vector<16x64xf32>
    %83 = arith.addf %72, %82 : vector<16x64xf32>
    %84 = arith.select %75, %77, %83 : vector<16x64xi1>, vector<16x64xf32>
    %85 = vector.extract_strided_slice %65 {offsets = [0, 64], sizes = [16, 16], strides = [1, 1]} : vector<16x96xf32> to vector<16x16xf32>
    %86 = vector.extract_strided_slice %65 {offsets = [0, 80], sizes = [16, 16], strides = [1, 1]} : vector<16x96xf32> to vector<16x16xf32>
    %c0_38 = arith.constant 0 : index
    %c0_39 = arith.constant 0 : index
    %c0_40 = arith.constant 0 : index
    %87 = vector.load %arg10[%c0_38, %c0_39, %c0_40] : memref<1x16x64xf32, #tpu.memory_space<vmem>>, vector<1x16x64xf32>
    %88 = vector.shape_cast %87 : vector<1x16x64xf32> to vector<16x64xf32>
    %89 = math.exp %88 : vector<16x64xf32>
    %cst_41 = arith.constant 0.000000e+00 : f32
    %90 = vector.broadcast %cst_41 : f32 to vector<16x64xf32>
    %91 = arith.subf %90, %89 : vector<16x64xf32>
    %92 = arith.mulf %84, %61 : vector<16x64xf32>
    %93 = vector.extract_strided_slice %84 {offsets = [0, 0], sizes = [8, 64], strides = [1, 1]} : vector<16x64xf32> to vector<8x64xf32>
    %94 = vector.shape_cast %93 : vector<8x64xf32> to vector<8x1x64xf32>
    %95 = vector.shape_cast %91 : vector<16x64xf32> to vector<1x16x64xf32>
    %96 = vector.broadcast %94 : vector<8x1x64xf32> to vector<8x16x64xf32>
    %97 = vector.broadcast %95 : vector<1x16x64xf32> to vector<8x16x64xf32>
    %98 = arith.mulf %96, %97 : vector<8x16x64xf32>
    %99 = math.exp %98 : vector<8x16x64xf32>
    %100 = vector.extract_strided_slice %92 {offsets = [0, 0], sizes = [8, 64], strides = [1, 1]} : vector<16x64xf32> to vector<8x64xf32>
    %101 = vector.shape_cast %100 : vector<8x64xf32> to vector<8x1x64xf32>
    %102 = vector.extract_strided_slice %85 {offsets = [0, 0], sizes = [8, 16], strides = [1, 1]} : vector<16x16xf32> to vector<8x16xf32>
    %103 = vector.shape_cast %102 : vector<8x16xf32> to vector<8x16x1xf32>
    %104 = vector.broadcast %101 : vector<8x1x64xf32> to vector<8x16x64xf32>
    %105 = vector.broadcast %103 : vector<8x16x1xf32> to vector<8x16x64xf32>
    %106 = arith.mulf %104, %105 : vector<8x16x64xf32>
    %107 = vector.extract_strided_slice %84 {offsets = [8, 0], sizes = [8, 64], strides = [1, 1]} : vector<16x64xf32> to vector<8x64xf32>
    %108 = vector.shape_cast %107 : vector<8x64xf32> to vector<8x1x64xf32>
    %109 = vector.shape_cast %91 : vector<16x64xf32> to vector<1x16x64xf32>
    %110 = vector.broadcast %108 : vector<8x1x64xf32> to vector<8x16x64xf32>
    %111 = vector.broadcast %109 : vector<1x16x64xf32> to vector<8x16x64xf32>
    %112 = arith.mulf %110, %111 : vector<8x16x64xf32>
    %113 = math.exp %112 : vector<8x16x64xf32>
    %114 = vector.extract_strided_slice %92 {offsets = [8, 0], sizes = [8, 64], strides = [1, 1]} : vector<16x64xf32> to vector<8x64xf32>
    %115 = vector.shape_cast %114 : vector<8x64xf32> to vector<8x1x64xf32>
    %116 = vector.extract_strided_slice %85 {offsets = [8, 0], sizes = [8, 16], strides = [1, 1]} : vector<16x16xf32> to vector<8x16xf32>
    %117 = vector.shape_cast %116 : vector<8x16xf32> to vector<8x16x1xf32>
    %118 = vector.broadcast %115 : vector<8x1x64xf32> to vector<8x16x64xf32>
    %119 = vector.broadcast %117 : vector<8x16x1xf32> to vector<8x16x64xf32>
    %120 = arith.mulf %118, %119 : vector<8x16x64xf32>
    %121 = tpu.concatenate %99, %113 in 2 : vector<8x16x64xf32>, vector<8x16x64xf32> -> vector<8x16x128xf32>
    %c0_42 = arith.constant 0 : index
    %c0_43 = arith.constant 0 : index
    %c0_44 = arith.constant 0 : index
    %122 = vector.load %arg18[%c0_42, %c0_43, %c0_44] : memref<8x16x128xf32, #tpu.memory_space<vmem>>, vector<8x16x128xf32>
    tpu.vector_store %arg18[%c0_42, %c0_43, %c0_44], %121 {strides = array<i32>} : memref<8x16x128xf32, #tpu.memory_space<vmem>>, vector<8x16x128xf32>,
    %123 = tpu.concatenate %106, %120 in 2 : vector<8x16x64xf32>, vector<8x16x64xf32> -> vector<8x16x128xf32>
    %c0_45 = arith.constant 0 : index
    %c0_46 = arith.constant 0 : index
    %c0_47 = arith.constant 0 : index
    %124 = vector.load %arg19[%c0_45, %c0_46, %c0_47] : memref<8x16x128xf32, #tpu.memory_space<vmem>>, vector<8x16x128xf32>
    tpu.vector_store %arg19[%c0_45, %c0_46, %c0_47], %123 {strides = array<i32>} : memref<8x16x128xf32, #tpu.memory_space<vmem>>, vector<8x16x128xf32>,
    %cst_48 = arith.constant 0.000000e+00 : f32
    %125 = vector.broadcast %cst_48 : f32 to vector<16x128xf32>
    %c0_i32_49 = arith.constant 0 : i32
    %126 = arith.index_cast %c0_i32_49 : i32 to index
    %c0_50 = arith.constant 0 : index
    %c0_51 = arith.constant 0 : index
    %127 = vector.load %arg18[%126, %c0_50, %c0_51] : memref<8x16x128xf32, #tpu.memory_space<vmem>>, vector<1x16x128xf32>
    %128 = vector.shape_cast %127 : vector<1x16x128xf32> to vector<16x128xf32>
    %129 = arith.mulf %128, %125 : vector<16x128xf32>
    %130 = arith.index_cast %c0_i32_49 : i32 to index
    %c0_52 = arith.constant 0 : index
    %c0_53 = arith.constant 0 : index
    %131 = vector.load %arg19[%130, %c0_52, %c0_53] : memref<8x16x128xf32, #tpu.memory_space<vmem>>, vector<1x16x128xf32>
    %132 = vector.shape_cast %131 : vector<1x16x128xf32> to vector<16x128xf32>
    %133 = arith.addf %129, %132 : vector<16x128xf32>
    %134 = arith.index_cast %c0_i32_49 : i32 to index
    %c0_54 = arith.constant 0 : index
    %c0_55 = arith.constant 0 : index
    %135 = vector.load %arg19[%134, %c0_54, %c0_55] : memref<8x16x128xf32, #tpu.memory_space<vmem>>, vector<1x16x128xf32>
    %136 = vector.shape_cast %135 : vector<1x16x128xf32> to vector<16x128xf32>
    %137 = vector.shape_cast %133 : vector<16x128xf32> to vector<1x16x128xf32>
    tpu.vector_store %arg19[%134, %c0_54, %c0_55], %137 {strides = array<i32>} : memref<8x16x128xf32, #tpu.memory_space<vmem>>, vector<1x16x128xf32>,
    %c1_i32 = arith.constant 1 : i32
    %138 = arith.index_cast %c1_i32 : i32 to index
    %c0_56 = arith.constant 0 : index
    %c0_57 = arith.constant 0 : index
    %139 = vector.load %arg18[%138, %c0_56, %c0_57] : memref<8x16x128xf32, #tpu.memory_space<vmem>>, vector<1x16x128xf32>
    %140 = vector.shape_cast %139 : vector<1x16x128xf32> to vector<16x128xf32>
    %141 = arith.mulf %140, %133 : vector<16x128xf32>
    %142 = arith.index_cast %c1_i32 : i32 to index
    %c0_58 = arith.constant 0 : index
    %c0_59 = arith.constant 0 : index
    %143 = vector.load %arg19[%142, %c0_58, %c0_59] : memref<8x16x128xf32, #tpu.memory_space<vmem>>, vector<1x16x128xf32>
    %144 = vector.shape_cast %143 : vector<1x16x128xf32> to vector<16x128xf32>
    %145 = arith.addf %141, %144 : vector<16x128xf32>
    %146 = arith.index_cast %c1_i32 : i32 to index
    %c0_60 = arith.constant 0 : index
    %c0_61 = arith.constant 0 : index
    %147 = vector.load %arg19[%146, %c0_60, %c0_61] : memref<8x16x128xf32, #tpu.memory_space<vmem>>, vector<1x16x128xf32>
    %148 = vector.shape_cast %147 : vector<1x16x128xf32> to vector<16x128xf32>
    %149 = vector.shape_cast %145 : vector<16x128xf32> to vector<1x16x128xf32>
    tpu.vector_store %arg19[%146, %c0_60, %c0_61], %149 {strides = array<i32>} : memref<8x16x128xf32, #tpu.memory_space<vmem>>, vector<1x16x128xf32>,
    %c2_i32 = arith.constant 2 : i32
    %150 = arith.index_cast %c2_i32 : i32 to index
    %c0_62 = arith.constant 0 : index
    %c0_63 = arith.constant 0 : index
    %151 = vector.load %arg18[%150, %c0_62, %c0_63] : memref<8x16x128xf32, #tpu.memory_space<vmem>>, vector<1x16x128xf32>
    %152 = vector.shape_cast %151 : vector<1x16x128xf32> to vector<16x128xf32>
    %153 = arith.mulf %152, %145 : vector<16x128xf32>
    %154 = arith.index_cast %c2_i32 : i32 to index
    %c0_64 = arith.constant 0 : index
    %c0_65 = arith.constant 0 : index
    %155 = vector.load %arg19[%154, %c0_64, %c0_65] : memref<8x16x128xf32, #tpu.memory_space<vmem>>, vector<1x16x128xf32>
    %156 = vector.shape_cast %155 : vector<1x16x128xf32> to vector<16x128xf32>
    %157 = arith.addf %153, %156 : vector<16x128xf32>
    %158 = arith.index_cast %c2_i32 : i32 to index
    %c0_66 = arith.constant 0 : index
    %c0_67 = arith.constant 0 : index
    %159 = vector.load %arg19[%158, %c0_66, %c0_67] : memref<8x16x128xf32, #tpu.memory_space<vmem>>, vector<1x16x128xf32>
    %160 = vector.shape_cast %159 : vector<1x16x128xf32> to vector<16x128xf32>
    %161 = vector.shape_cast %157 : vector<16x128xf32> to vector<1x16x128xf32>
    tpu.vector_store %arg19[%158, %c0_66, %c0_67], %161 {strides = array<i32>} : memref<8x16x128xf32, #tpu.memory_space<vmem>>, vector<1x16x128xf32>,
    %c3_i32 = arith.constant 3 : i32
    %162 = arith.index_cast %c3_i32 : i32 to index
    %c0_68 = arith.constant 0 : index
    %c0_69 = arith.constant 0 : index
    %163 = vector.load %arg18[%162, %c0_68, %c0_69] : memref<8x16x128xf32, #tpu.memory_space<vmem>>, vector<1x16x128xf32>
    %164 = vector.shape_cast %163 : vector<1x16x128xf32> to vector<16x128xf32>
    %165 = arith.mulf %164, %157 : vector<16x128xf32>
    %166 = arith.index_cast %c3_i32 : i32 to index
    %c0_70 = arith.constant 0 : index
    %c0_71 = arith.constant 0 : index
    %167 = vector.load %arg19[%166, %c0_70, %c0_71] : memref<8x16x128xf32, #tpu.memory_space<vmem>>, vector<1x16x128xf32>
    %168 = vector.shape_cast %167 : vector<1x16x128xf32> to vector<16x128xf32>
    %169 = arith.addf %165, %168 : vector<16x128xf32>
    %170 = arith.index_cast %c3_i32 : i32 to index
    %c0_72 = arith.constant 0 : index
    %c0_73 = arith.constant 0 : index
    %171 = vector.load %arg19[%170, %c0_72, %c0_73] : memref<8x16x128xf32, #tpu.memory_space<vmem>>, vector<1x16x128xf32>
    %172 = vector.shape_cast %171 : vector<1x16x128xf32> to vector<16x128xf32>
    %173 = vector.shape_cast %169 : vector<16x128xf32> to vector<1x16x128xf32>
    tpu.vector_store %arg19[%170, %c0_72, %c0_73], %173 {strides = array<i32>} : memref<8x16x128xf32, #tpu.memory_space<vmem>>, vector<1x16x128xf32>,
    %c4_i32 = arith.constant 4 : i32
    %174 = arith.index_cast %c4_i32 : i32 to index
    %c0_74 = arith.constant 0 : index
    %c0_75 = arith.constant 0 : index
    %175 = vector.load %arg18[%174, %c0_74, %c0_75] : memref<8x16x128xf32, #tpu.memory_space<vmem>>, vector<1x16x128xf32>
    %176 = vector.shape_cast %175 : vector<1x16x128xf32> to vector<16x128xf32>
    %177 = arith.mulf %176, %169 : vector<16x128xf32>
    %178 = arith.index_cast %c4_i32 : i32 to index
    %c0_76 = arith.constant 0 : index
    %c0_77 = arith.constant 0 : index
    %179 = vector.load %arg19[%178, %c0_76, %c0_77] : memref<8x16x128xf32, #tpu.memory_space<vmem>>, vector<1x16x128xf32>
    %180 = vector.shape_cast %179 : vector<1x16x128xf32> to vector<16x128xf32>
    %181 = arith.addf %177, %180 : vector<16x128xf32>
    %182 = arith.index_cast %c4_i32 : i32 to index
    %c0_78 = arith.constant 0 : index
    %c0_79 = arith.constant 0 : index
    %183 = vector.load %arg19[%182, %c0_78, %c0_79] : memref<8x16x128xf32, #tpu.memory_space<vmem>>, vector<1x16x128xf32>
    %184 = vector.shape_cast %183 : vector<1x16x128xf32> to vector<16x128xf32>
    %185 = vector.shape_cast %181 : vector<16x128xf32> to vector<1x16x128xf32>
    tpu.vector_store %arg19[%182, %c0_78, %c0_79], %185 {strides = array<i32>} : memref<8x16x128xf32, #tpu.memory_space<vmem>>, vector<1x16x128xf32>,
    %c5_i32 = arith.constant 5 : i32
    %186 = arith.index_cast %c5_i32 : i32 to index
    %c0_80 = arith.constant 0 : index
    %c0_81 = arith.constant 0 : index
    %187 = vector.load %arg18[%186, %c0_80, %c0_81] : memref<8x16x128xf32, #tpu.memory_space<vmem>>, vector<1x16x128xf32>
    %188 = vector.shape_cast %187 : vector<1x16x128xf32> to vector<16x128xf32>
    %189 = arith.mulf %188, %181 : vector<16x128xf32>
    %190 = arith.index_cast %c5_i32 : i32 to index
    %c0_82 = arith.constant 0 : index
    %c0_83 = arith.constant 0 : index
    %191 = vector.load %arg19[%190, %c0_82, %c0_83] : memref<8x16x128xf32, #tpu.memory_space<vmem>>, vector<1x16x128xf32>
    %192 = vector.shape_cast %191 : vector<1x16x128xf32> to vector<16x128xf32>
    %193 = arith.addf %189, %192 : vector<16x128xf32>
    %194 = arith.index_cast %c5_i32 : i32 to index
    %c0_84 = arith.constant 0 : index
    %c0_85 = arith.constant 0 : index
    %195 = vector.load %arg19[%194, %c0_84, %c0_85] : memref<8x16x128xf32, #tpu.memory_space<vmem>>, vector<1x16x128xf32>
    %196 = vector.shape_cast %195 : vector<1x16x128xf32> to vector<16x128xf32>
    %197 = vector.shape_cast %193 : vector<16x128xf32> to vector<1x16x128xf32>
    tpu.vector_store %arg19[%194, %c0_84, %c0_85], %197 {strides = array<i32>} : memref<8x16x128xf32, #tpu.memory_space<vmem>>, vector<1x16x128xf32>,
    %c6_i32 = arith.constant 6 : i32
    %198 = arith.index_cast %c6_i32 : i32 to index
    %c0_86 = arith.constant 0 : index
    %c0_87 = arith.constant 0 : index
    %199 = vector.load %arg18[%198, %c0_86, %c0_87] : memref<8x16x128xf32, #tpu.memory_space<vmem>>, vector<1x16x128xf32>
    %200 = vector.shape_cast %199 : vector<1x16x128xf32> to vector<16x128xf32>
    %201 = arith.mulf %200, %193 : vector<16x128xf32>
    %202 = arith.index_cast %c6_i32 : i32 to index
    %c0_88 = arith.constant 0 : index
    %c0_89 = arith.constant 0 : index
    %203 = vector.load %arg19[%202, %c0_88, %c0_89] : memref<8x16x128xf32, #tpu.memory_space<vmem>>, vector<1x16x128xf32>
    %204 = vector.shape_cast %203 : vector<1x16x128xf32> to vector<16x128xf32>
    %205 = arith.addf %201, %204 : vector<16x128xf32>
    %206 = arith.index_cast %c6_i32 : i32 to index
    %c0_90 = arith.constant 0 : index
    %c0_91 = arith.constant 0 : index
    %207 = vector.load %arg19[%206, %c0_90, %c0_91] : memref<8x16x128xf32, #tpu.memory_space<vmem>>, vector<1x16x128xf32>
    %208 = vector.shape_cast %207 : vector<1x16x128xf32> to vector<16x128xf32>
    %209 = vector.shape_cast %205 : vector<16x128xf32> to vector<1x16x128xf32>
    tpu.vector_store %arg19[%206, %c0_90, %c0_91], %209 {strides = array<i32>} : memref<8x16x128xf32, #tpu.memory_space<vmem>>, vector<1x16x128xf32>,
    %c7_i32 = arith.constant 7 : i32
    %210 = arith.index_cast %c7_i32 : i32 to index
    %c0_92 = arith.constant 0 : index
    %c0_93 = arith.constant 0 : index
    %211 = vector.load %arg18[%210, %c0_92, %c0_93] : memref<8x16x128xf32, #tpu.memory_space<vmem>>, vector<1x16x128xf32>
    %212 = vector.shape_cast %211 : vector<1x16x128xf32> to vector<16x128xf32>
    %213 = arith.mulf %212, %205 : vector<16x128xf32>
    %214 = arith.index_cast %c7_i32 : i32 to index
    %c0_94 = arith.constant 0 : index
    %c0_95 = arith.constant 0 : index
    %215 = vector.load %arg19[%214, %c0_94, %c0_95] : memref<8x16x128xf32, #tpu.memory_space<vmem>>, vector<1x16x128xf32>
    %216 = vector.shape_cast %215 : vector<1x16x128xf32> to vector<16x128xf32>
    %217 = arith.addf %213, %216 : vector<16x128xf32>
    %218 = arith.index_cast %c7_i32 : i32 to index
    %c0_96 = arith.constant 0 : index
    %c0_97 = arith.constant 0 : index
    %219 = vector.load %arg19[%218, %c0_96, %c0_97] : memref<8x16x128xf32, #tpu.memory_space<vmem>>, vector<1x16x128xf32>
    %220 = vector.shape_cast %219 : vector<1x16x128xf32> to vector<16x128xf32>
    %221 = vector.shape_cast %217 : vector<16x128xf32> to vector<1x16x128xf32>
    tpu.vector_store %arg19[%218, %c0_96, %c0_97], %221 {strides = array<i32>} : memref<8x16x128xf32, #tpu.memory_space<vmem>>, vector<1x16x128xf32>,
    %c8_i32 = arith.constant 8 : i32
    %c0_98 = arith.constant 0 : index
    %c0_99 = arith.constant 0 : index
    %c0_100 = arith.constant 0 : index
    %222 = vector.load %arg19[%c0_98, %c0_99, %c0_100] : memref<8x16x128xf32, #tpu.memory_space<vmem>>, vector<8x16x64xf32>
    %223 = vector.extract_strided_slice %86 {offsets = [0, 0], sizes = [8, 16], strides = [1, 1]} : vector<16x16xf32> to vector<8x16xf32>
    %224 = vector.shape_cast %223 : vector<8x16xf32> to vector<8x16x1xf32>
    %225 = vector.broadcast %224 : vector<8x16x1xf32> to vector<8x16x64xf32>
    %226 = arith.mulf %222, %225 : vector<8x16x64xf32>
    %cst_101 = arith.constant dense<0.000000e+00> : vector<8x64xf32>
    %227 = vector.multi_reduction <add>, %226, %cst_101 [1] : vector<8x16x64xf32> to vector<8x64xf32>
    %c0_102 = arith.constant 0 : index
    %c0_103 = arith.constant 0 : index
    %c64 = arith.constant 64 : index
    %228 = vector.load %arg19[%c0_102, %c0_103, %c64] : memref<8x16x128xf32, #tpu.memory_space<vmem>>, vector<8x16x64xf32>
    %229 = vector.extract_strided_slice %86 {offsets = [8, 0], sizes = [8, 16], strides = [1, 1]} : vector<16x16xf32> to vector<8x16xf32>
    %230 = vector.shape_cast %229 : vector<8x16xf32> to vector<8x16x1xf32>
    %231 = vector.broadcast %230 : vector<8x16x1xf32> to vector<8x16x64xf32>
    %232 = arith.mulf %228, %231 : vector<8x16x64xf32>
    %cst_104 = arith.constant dense<0.000000e+00> : vector<8x64xf32>
    %233 = vector.multi_reduction <add>, %232, %cst_104 [1] : vector<8x16x64xf32> to vector<8x64xf32>
    %234 = tpu.concatenate %227, %233 in 0 : vector<8x64xf32>, vector<8x64xf32> -> vector<16x64xf32>
    %c0_105 = arith.constant 0 : index
    %c0_106 = arith.constant 0 : index
    %c0_107 = arith.constant 0 : index
    %235 = vector.load %arg11[%c0_105, %c0_106, %c0_107] : memref<1x1x64xf32, #tpu.memory_space<vmem>>, vector<1x1x64xf32>
    %236 = vector.shape_cast %235 : vector<1x1x64xf32> to vector<1x64xf32>
    %237 = vector.broadcast %236 : vector<1x64xf32> to vector<16x64xf32>
    %238 = arith.mulf %61, %237 : vector<16x64xf32>
    %239 = arith.addf %234, %238 : vector<16x64xf32>
    %240 = arith.negf %23 : vector<16x64xf32>
    %241 = math.exp %240 : vector<16x64xf32>
    %cst_108 = arith.constant 1.000000e+00 : f32
    %242 = vector.broadcast %cst_108 : f32 to vector<16x64xf32>
    %243 = arith.addf %242, %241 : vector<16x64xf32>
    %244 = arith.divf %242, %243 : vector<16x64xf32>
    %245 = arith.mulf %23, %244 : vector<16x64xf32>
    %246 = arith.mulf %239, %245 : vector<16x64xf32>
    %c0_109 = arith.constant 0 : index
    %c0_110 = arith.constant 0 : index
    %c0_111 = arith.constant 0 : index
    %247 = vector.load %arg12[%c0_109, %c0_110, %c0_111] : memref<1x64x32xbf16, #tpu.memory_space<vmem>>, vector<1x64x32xbf16>
    %248 = vector.shape_cast %247 : vector<1x64x32xbf16> to vector<64x32xbf16>
    %249 = arith.truncf %246 : vector<16x64xf32> to vector<16x64xbf16>
    %cst_112 = arith.constant dense<0.000000e+00> : vector<16x32xf32>
    %250 = tpu.matmul %249, %248, %cst_112 {dimension_numbers = #tpu.dot_dimension_numbers<[1], [0], [0], [1], [0, 0, 1, 1], [], []>} : vector<16x64xbf16>, vector<64x32xbf16>, vector<16x32xf32> -> vector<16x32xf32>
    %251 = arith.addf %250, %3 : vector<16x32xf32>
    %c0_113 = arith.constant 0 : index
    %c0_114 = arith.constant 0 : index
    %252 = vector.load %arg16[%c0_113, %c0_114] : memref<16x32xf32, #tpu.memory_space<vmem>>, vector<16x32xf32>
    tpu.vector_store %arg16[%c0_113, %c0_114], %251 {strides = array<i32>} : memref<16x32xf32, #tpu.memory_space<vmem>>, vector<16x32xf32>,
    %c1_i32_115 = arith.constant 1 : i32
    %253 = arith.cmpi eq, %arg0, %c1_i32_115 : i32
    %254 = arith.extui %253 : i1 to i32
    %c0_i32_116 = arith.constant 0 : i32
    %255 = arith.cmpi ne, %254, %c0_i32_116 : i32
    scf.if %255 {
      %c0_117 = arith.constant 0 : index
      %c0_118 = arith.constant 0 : index
      %256 = vector.load %arg16[%c0_117, %c0_118] : memref<16x32xf32, #tpu.memory_space<vmem>>, vector<16x32xf32>
      %c0_119 = arith.constant 0 : index
      %c0_120 = arith.constant 0 : index
      %257 = vector.load %arg13[%c0_119, %c0_120] : memref<32x4xbf16, #tpu.memory_space<vmem>>, vector<32x4xbf16>
      %258 = arith.truncf %256 : vector<16x32xf32> to vector<16x32xbf16>
      %cst_121 = arith.constant dense<0.000000e+00> : vector<16x4xf32>
      %259 = tpu.matmul %258, %257, %cst_121 {dimension_numbers = #tpu.dot_dimension_numbers<[1], [0], [0], [1], [0, 0, 1, 1], [], []>} : vector<16x32xbf16>, vector<32x4xbf16>, vector<16x4xf32> -> vector<16x4xf32>
      %c0_122 = arith.constant 0 : index
      %c0_123 = arith.constant 0 : index
      %260 = vector.load %arg14[%c0_122, %c0_123] : memref<1x4xf32, #tpu.memory_space<vmem>>, vector<1x4xf32>
      %261 = vector.broadcast %260 : vector<1x4xf32> to vector<16x4xf32>
      %262 = arith.addf %259, %261 : vector<16x4xf32>
      %263 = math.tanh %262 : vector<16x4xf32>
      %264 = vector.shape_cast %263 : vector<16x4xf32> to vector<2x8x4xf32>
      %c0_124 = arith.constant 0 : index
      %c0_125 = arith.constant 0 : index
      %c0_126 = arith.constant 0 : index
      %265 = vector.load %arg15[%c0_124, %c0_125, %c0_126] : memref<2x8x4xf32, #tpu.memory_space<vmem>>, vector<2x8x4xf32>
      tpu.vector_store %arg15[%c0_124, %c0_125, %c0_126], %264 {strides = array<i32>} : memref<2x8x4xf32, #tpu.memory_space<vmem>>, vector<2x8x4xf32>,
    } else {
    }
    return
  }
  func.func @transform_0(%arg0: i32) -> (i32, i32, i32) {
    %c0_i32 = arith.constant 0 : i32
    %c0_i32_0 = arith.constant 0 : i32
    %c0_i32_1 = arith.constant 0 : i32
    %c0_i32_2 = arith.constant 0 : i32
    return %c0_i32, %c0_i32_0, %c0_i32_1 : i32, i32, i32
  }
  func.func @transform_1(%arg0: i32) -> (i32, i32) {
    %c0_i32 = arith.constant 0 : i32
    %c0_i32_0 = arith.constant 0 : i32
    %c0_i32_1 = arith.constant 0 : i32
    return %c0_i32, %c0_i32_0 : i32, i32
  }
  func.func @transform_2(%arg0: i32) -> (i32, i32) {
    %c0_i32 = arith.constant 0 : i32
    %c0_i32_0 = arith.constant 0 : i32
    %c0_i32_1 = arith.constant 0 : i32
    return %c0_i32, %c0_i32_0 : i32, i32
  }
  func.func @transform_3(%arg0: i32) -> (i32, i32, i32) {
    %c0_i32 = arith.constant 0 : i32
    %c0_i32_0 = arith.constant 0 : i32
    %c0_i32_1 = arith.constant 0 : i32
    return %arg0, %c0_i32, %c0_i32_0 : i32, i32, i32
  }
  func.func @transform_4(%arg0: i32) -> (i32, i32, i32) {
    %c0_i32 = arith.constant 0 : i32
    %c0_i32_0 = arith.constant 0 : i32
    %c0_i32_1 = arith.constant 0 : i32
    return %arg0, %c0_i32, %c0_i32_0 : i32, i32, i32
  }
  func.func @transform_5(%arg0: i32) -> (i32, i32, i32) {
    %c0_i32 = arith.constant 0 : i32
    %c0_i32_0 = arith.constant 0 : i32
    %c0_i32_1 = arith.constant 0 : i32
    return %arg0, %c0_i32, %c0_i32_0 : i32, i32, i32
  }
  func.func @transform_6(%arg0: i32) -> (i32, i32, i32) {
    %c0_i32 = arith.constant 0 : i32
    %c0_i32_0 = arith.constant 0 : i32
    %c0_i32_1 = arith.constant 0 : i32
    return %arg0, %c0_i32, %c0_i32_0 : i32, i32, i32
  }
  func.func @transform_7(%arg0: i32) -> (i32, i32, i32) {
    %c0_i32 = arith.constant 0 : i32
    %c0_i32_0 = arith.constant 0 : i32
    %c0_i32_1 = arith.constant 0 : i32
    return %arg0, %c0_i32, %c0_i32_0 : i32, i32, i32
  }
  func.func @transform_8(%arg0: i32) -> (i32, i32, i32) {
    %c0_i32 = arith.constant 0 : i32
    %c0_i32_0 = arith.constant 0 : i32
    %c0_i32_1 = arith.constant 0 : i32
    return %arg0, %c0_i32, %c0_i32_0 : i32, i32, i32
  }
  func.func @transform_9(%arg0: i32) -> (i32, i32, i32) {
    %c0_i32 = arith.constant 0 : i32
    %c0_i32_0 = arith.constant 0 : i32
    %c0_i32_1 = arith.constant 0 : i32
    return %arg0, %c0_i32, %c0_i32_0 : i32, i32, i32
  }
  func.func @transform_10(%arg0: i32) -> (i32, i32, i32) {
    %c0_i32 = arith.constant 0 : i32
    %c0_i32_0 = arith.constant 0 : i32
    %c0_i32_1 = arith.constant 0 : i32
    return %arg0, %c0_i32, %c0_i32_0 : i32, i32, i32
  }
  func.func @transform_11(%arg0: i32) -> (i32, i32, i32) {
    %c0_i32 = arith.constant 0 : i32
    %c0_i32_0 = arith.constant 0 : i32
    %c0_i32_1 = arith.constant 0 : i32
    return %arg0, %c0_i32, %c0_i32_0 : i32, i32, i32
  }
  func.func @transform_12(%arg0: i32) -> (i32, i32) {
    %c0_i32 = arith.constant 0 : i32
    %c0_i32_0 = arith.constant 0 : i32
    %c0_i32_1 = arith.constant 0 : i32
    return %c0_i32, %c0_i32_0 : i32, i32
  }
  func.func @transform_13(%arg0: i32) -> (i32, i32) {
    %c0_i32 = arith.constant 0 : i32
    %c0_i32_0 = arith.constant 0 : i32
    %c0_i32_1 = arith.constant 0 : i32
    return %c0_i32, %c0_i32_0 : i32, i32
  }
  func.func @transform_14(%arg0: i32) -> (i32, i32, i32) {
    %c0_i32 = arith.constant 0 : i32
    %c0_i32_0 = arith.constant 0 : i32
    %c0_i32_1 = arith.constant 0 : i32
    %c0_i32_2 = arith.constant 0 : i32
    return %c0_i32, %c0_i32_0, %c0_i32_1 : i32, i32, i32
  }
}

</mosaic_0001>

<bundles_post_ra>
// kernel: net_forward.1
= control target key start
LH: loop header
LB: loop body
LE: loop exit
PB: predicated region body
PF: predicated region fallthrough
CT: control target
= control target key end

     0   :  { %s4496_s0 = inlined_call_operand.vmem [shape: f32[2,8,4], index: 0, kind: input, shape index: {}]   ;;  %s4497_s1 = inlined_call_operand.vmem [shape: bf16[4,32], index: 1, kind: input, shape index: {}]   ;;  %s4498_s2 = inlined_call_operand.hbm [shape: f32[1,32], index: 2, kind: input, shape index: {}]   ;;  %s4499_s3 = inlined_call_operand.vmem [shape: f32[2,1,32], index: 3, kind: input, shape index: {}]   ;;  %s4500_s4 = inlined_call_operand.vmem [shape: bf16[2,32,128], index: 4, kind: input, shape index: {}]   ;;  %s4501_s5 = inlined_call_operand.hbm [shape: f32[2,4,64], index: 5, kind: input, shape index: {}]   ;;  %s4502_s6 = inlined_call_operand.hbm [shape: f32[2,1,64], index: 6, kind: input, shape index: {}]   ;;  %s4503_s7 = inlined_call_operand.vmem [shape: bf16[2,64,96], index: 7, kind: input, shape index: {}]   ;;  %s4504_s8 = inlined_call_operand.hbm [shape: f32[2,1,64], index: 8, kind: input, shape index: {}]   ;;  %s4505_s9 = inlined_call_operand.vmem [shape: f32[2,16,64], index: 9, kind: input, shape index: {}]   ;;  %s4506_s10 = inlined_call_operand.hbm [shape: f32[2,1,64], index: 10, kind: input, shape index: {}]   ;;  %s4507_s11 = inlined_call_operand.vmem [shape: bf16[2,64,32], index: 11, kind: input, shape index: {}]   ;;  %s4508_s12 = inlined_call_operand.vmem [shape: bf16[32,4], index: 12, kind: input, shape index: {}]   ;;  %s4509_s13 = inlined_call_operand.hbm [shape: f32[1,4], index: 13, kind: input, shape index: {}]   ;;  %s4510_s14 = inlined_call_operand.vmem [shape: f32[2,8,4], index: 14, kind: output, shape index: {}]  }
   0x1   :  { %4529 = sst [smem:[#allocation35_spill]] %s4496_s0 }
   0x2   :  { %4530 = sst [smem:[#allocation36_spill]] %s4497_s1 }
   0x3   :  { %4531 = sst [smem:[#allocation37_spill]] %s4501_s5 }
   0x4   :  { %4532 = sst [smem:[#allocation38_spill]] %s4504_s8 }
   0x5   :  { %4533 = sst [smem:[#allocation39_spill]] %s4505_s9 }
   0x6   :  { %4534 = sst [smem:[#allocation40_spill]] %s4507_s11 }
   0x7   :  { %4535 = sst [smem:[#allocation41_spill]] %s4508_s12 }
   0x8   :  { %4536 = sst [smem:[#allocation42_spill]] %s4510_s14 }
   0x9   :  { %19 = vsyncpa [#allocation7], 0 }
   0xa   :  { %20 = vsyncpa [#allocation9], 0 }
   0xb   :  { %22 = vsyncpa [#allocation9 + $0x1], 0 }
   0xc   :  { %23 = vsyncpa [#allocation12], 0 }
   0xd   :  { %25 = vsyncpa [#allocation12 + $0x1], 0 }
   0xe   :  { %26 = vsyncpa [#allocation15], 0  ;;  %s3370_s29 = smov 0   ;;  %s3372_s30 = smov 0  }
   0xf   :  { %s3374_s15 = smov 0   ;;  %s3376_s16 = smov 0  }
  0x10 LB: > { %4537 = sst [smem:[#allocation20_spill]] %s3275_s15  ;;  %s3391_s17 = sadd.s32 1, %s3279_s16   ;;  %s3279_s16 = sphi %s3376_s16, %s4596_s16   ;;  %s3275_s15 = sphi %s3374_s15, %s4598_s15   ;;  %s3271_s30 = sphi %s3372_s30, %s4600_s30   ;;  %s3267_s29 = sphi %s3370_s29, %s4599_s29  }
  0x11   : > { %4538 = sst [smem:[#allocation21_spill]] %s3391_s17  ;;  %s154_s18 = sadd.s32 1, %s3275_s15 }
  0x12   : > { %s151_s19 = ssub.s32 %s3279_s16, %s3391_s17  ;;  %p161_p0 = scmp.ne.s32.totalorder %s3275_s15, %s3271_s30 }
  0x13   : > { %p152_p1 = scmp.eq.s32.totalorder %s151_s19, 0  ;;  %p162_p2 = scmp.eq.s32.totalorder %s3279_s16, 0 }
  0x14   : > { %p2898_p3 = scmp.lt.s32.totalorder %s3279_s16, 2  ;;  %s3405_s22 = sand.u32 1, %s3275_s15  }
  0x15   : > { %s3401_s20 = scalar_select %p152_p1, %s3275_s15, %s154_s18  }
  0x16   : > { %p163_p4 = por %p162_p2, %p161_p0  ;;  %s2744_s23 = sshll.u32 %s3405_s22, 2 }
  0x17   : > { %4539 = sst [smem:[#allocation22_spill]] %s3401_s20  ;;  %s2745_s24 = sshll.u32 %s3279_s16, 6 }
  0x18   : > { %s4540_s5 = sld [smem:[#allocation37_spill]]  ;;  %s459_s28 = scalar_lea.vmem [#allocation8], %s2744_s23 }
  0x19   : > { %s466_s19 = sshll.u32 %s459_s28, 4  ;;  %p3414_p5 = pnand %p2898_p3, %p163_p4  ;;  %s3418_s19 = int_to_ptr.vmem [resolvable:$true] %s466_s19 }
  0x1a   : > { %s3421_s21 = sshll.u32 %s3279_s16, 4  ;;  %s4542_s20 = sand.u32 1, %s3279_s16  }
  0x1b   : > { %s4541_s18 = scalar_select %p3414_p5, 1, 0 }
  0x1c   : > { %s3425_s15 = scalar_lea.sflag [#allocation9], %s4542_s20  ;;  %p3431_p7 = pneg %p3414_p5 }
  0x1e   : > { %s3412_s27 = scalar_lea.hbm %s4540_s5, %s2745_s24  ;;  %s3062_s28 = scalar_lea.hbm %s4540_s5, 128 }
  0x1f   : > { %s3057_s24 = scalar_lea.hbm %s3412_s27, 64  ;;  %p3063_p10 = scmp.lt.u32.totalorder %s3412_s27, %s4540_s5 }
  0x20   : > { %p3058_p6 = scmp.ne.s32.totalorder %s3412_s27, %s3057_s24  ;;  %p3064_p11 = scmp.lt.u32.totalorder %s3062_s28, %s3057_s24 }
  0x21   : > { %s4543_s25 = scalar_select %p3431_p7, 1, 0 }
  0x22   : > { %p3060_p8 = pnand %p3431_p7, %p3058_p6  ;;  %p3065_p12 = por %p3064_p11, %p3063_p10 }
  0x23   : > { %p3066_p13 = scmp.lt.u32.totalorder %s3057_s24, %s3412_s27 }
  0x24   : > { %p3061_p9 = pneg %p3060_p8 }
  0x25   : > { %p3067_p0 = por %p3066_p13, %p3065_p12 }
  0x27   : > { %p3068_p1 = pnand %p3067_p0, %p3061_p9 }
  0x29   : > { %3071 = shalt.err (!%p3068_p1)
}
  0x2a   : > { %s3072_s20 = scalar_lea.vmem %s3418_s19, 64  ;;  %s3281_s23 = smov [#allocation8]  }
  0x2b   : > { %p3073_p2 = scmp.ne.s32.totalorder %s3418_s19, %s3072_s20  ;;  %s3077_s26 = sshll.u32 %s3281_s23, 4  ;;  %s3078_s26 = int_to_ptr.vmem [resolvable:$false] %s3077_s26 }
  0x2c   : > { %s3079_s14 = scalar_lea.vmem %s3078_s26, 128  ;;  %p3080_p6 = scmp.lt.s32.totalorder %s3418_s19, %s3078_s26 }
  0x2d   : > { %p3075_p3 = pnand %p3073_p2, %p3431_p7  ;;  %p3081_p8 = scmp.lt.s32.totalorder %s3079_s14, %s3072_s20 }
  0x2f   : > { %p3076_p4 = pneg %p3075_p3  ;;  %p3082_p10 = por %p3081_p8, %p3080_p6 }
  0x31   : > { %p3083_p11 = pnand %p3082_p10, %p3076_p4 }
  0x33   : > { %3086 = shalt.err (!%p3083_p11)
}
  0x34   : > { %2886 = dma.hbm_to_vmem [thread:$0]  (!%p3414_p5), %s3412_s27, 64, %s3418_s19, %s3425_s15  }
  0x35   : > { %s4544_s8 = sld [smem:[#allocation38_spill]]  ;;  %s501_s20 = scalar_lea.vmem [#allocation11], %s3405_s22 }
  0x36   : > { %s508_s23 = sshll.u32 %s501_s20, 4  ;;  %s4545_s26 = sand.u32 1, %s3279_s16   ;;  %s509_s23 = int_to_ptr.vmem [resolvable:$true] %s508_s23 }
  0x37   : > { %s3464_s14 = scalar_lea.sflag [#allocation12], %s4545_s26 }
  0x3b   : > { %s3459_s28 = scalar_lea.hbm %s4544_s8, %s3421_s21  ;;  %s3092_s17 = scalar_lea.hbm %s4544_s8, 32 }
  0x3c   : > { %s3087_s5 = scalar_lea.hbm %s3459_s28, 16  ;;  %p3093_p0 = scmp.lt.u32.totalorder %s3459_s28, %s4544_s8 }
  0x3d   : > { %p3088_p9 = scmp.ne.s32.totalorder %s3459_s28, %s3087_s5  ;;  %p3094_p1 = scmp.lt.u32.totalorder %s3092_s17, %s3087_s5 }
  0x3e   : > { %p3096_p3 = scmp.lt.u32.totalorder %s3087_s5, %s3459_s28 }
  0x3f   : > { %p3090_p12 = pnand %p3088_p9, %p3431_p7  ;;  %p3095_p2 = por %p3094_p1, %p3093_p0 }
  0x41   : > { %p3091_p13 = pneg %p3090_p12  ;;  %p3097_p4 = por %p3096_p3, %p3095_p2 }
  0x43   : > { %p3098_p6 = pnand %p3097_p4, %p3091_p13 }
  0x45   : > { %3101 = shalt.err (!%p3098_p6)
}
  0x46   : > { %s3102_s20 = scalar_lea.vmem %s509_s23, 16  ;;  %s3282_s26 = smov [#allocation11]  }
  0x47   : > { %p3103_p8 = scmp.ne.s32.totalorder %s509_s23, %s3102_s20  ;;  %s3107_s0 = sshll.u32 %s3282_s26, 4  ;;  %s3108_s0 = int_to_ptr.vmem [resolvable:$false] %s3107_s0 }
  0x48   : > { %s3109_s27 = scalar_lea.vmem %s3108_s0, 32  ;;  %p3110_p9 = scmp.lt.s32.totalorder %s509_s23, %s3108_s0 }
  0x49   : > { %p3105_p10 = pnand %p3103_p8, %p3431_p7  ;;  %p3111_p12 = scmp.lt.s32.totalorder %s3109_s27, %s3102_s20 }
  0x4b   : > { %p3106_p11 = pneg %p3105_p10  ;;  %p3112_p5 = por %p3111_p12, %p3110_p9 }
  0x4d   : > { %p3113_p0 = pnand %p3112_p5, %p3106_p11 }
  0x4f   : > { %3116 = shalt.err (!%p3113_p0)
}
  0x50   : > { %p4546_p1 = scmp.ne.s32.totalorder %s4541_s18, 0  ;;  %s3485_s5 = sadd.s32 4294967295, %s3279_s16  }
  0x51   : > { %p167_p13 = scmp.ne.s32.totalorder %s3271_s30, %s3267_s29  ;;  %p4519_p5 = scmp.eq.s32.totalorder %s3485_s5, 0 }
  0x52   : > { %2892 = dma.hbm_to_vmem [thread:$0]  (!%p4546_p1), %s3459_s28, 16, %s509_s23, %s3464_s14  }
  0x53   : > { %p2740_p2 = scmp.ge.s32.totalorder %s3279_s16, 1  ;;  %p397_p3 = scmp.lt.s32.totalorder %s3279_s16, 3 }
  0x54   : > { %p3495_p6 = por %p4519_p5, %p167_p13  ;;  %s3283_s28 = smov [#allocation6]  }
  0x55   : > { %p3499_p8 = pnand %p2740_p2, %p397_p3  ;;  %s416_s23 = sshll.u32 %s3283_s28, 4  ;;  %s417_s23 = int_to_ptr.vmem [resolvable:$true] %s416_s23 }
  0x56   : > { %s4547_s0 = scalar_select %p3495_p6, 1, 0 }
  0x57   : > { %s4548_s12 = scalar_select %p3499_p8, 1, 0 }
  0x58   : > { %p2876_p10 = pneg %p3499_p8  ;;  %s3284_s29 = smov [#allocation14]  }
  0x59   : > { %s430_s19 = sshll.u32 %s3284_s29, 4  ;;  %s3517_s20 = scalar_lea.hbm %s4502_s6, %s3421_s21  ;;  %s3505_s19 = int_to_ptr.vmem [resolvable:$true] %s430_s19 }
  0x5a   : > { %p3509_p11 = pnand %p2876_p10, %p4519_p5  ;;  %s476_s26 = scalar_lea.vmem [#allocation10], %s3405_s22 }
  0x5b   : > { %s483_s27 = sshll.u32 %s476_s26, 4  ;;  %s3117_s8 = scalar_lea.hbm %s4498_s2, 16  ;;  %s3520_s27 = int_to_ptr.vmem [resolvable:$true] %s483_s27 }
  0x5c   : > { %p3118_p9 = scmp.ne.s32.totalorder %s4498_s2, %s3117_s8  ;;  %p3119_p12 = pneg %p3509_p11 }
  0x5d   : > { %p3124_p2 = scmp.lt.u32.totalorder %s3117_s8, %s4498_s2 }
  0x5e   : > { %p3120_p0 = pnand %p3119_p12, %p3118_p9 }
  0x60   : > { %p3121_p13 = pneg %p3120_p0 }
  0x62   : > { %p3126_p3 = pnand %p3124_p2, %p3121_p13 }
  0x64   : > { %3129 = shalt.err (!%p3126_p3)
}
  0x65   : > { %s3130_s26 = scalar_lea.vmem %s417_s23, 16  ;;  %s3137_s1 = scalar_lea.vmem %s417_s23, 32 }
  0x66   : > { %p3131_p10 = scmp.ne.s32.totalorder %s417_s23, %s3130_s26  ;;  %p3138_p6 = scmp.lt.s32.totalorder %s417_s23, %s417_s23 }
  0x67   : > { %p3139_p8 = scmp.lt.s32.totalorder %s3137_s1, %s3130_s26 }
  0x68   : > { %p3133_p4 = pnand %p3131_p10, %p3119_p12 }
  0x69   : > { %p3140_p1 = por %p3139_p8, %p3138_p6 }
  0x6a   : > { %p3134_p5 = pneg %p3133_p4 }
  0x6c   : > { %p3141_p7 = pnand %p3140_p1, %p3134_p5 }
  0x6e   : > { %3144 = shalt.err (!%p3141_p7)
}
  0x6f   : > { %2879 = dma.hbm_to_vmem [thread:$0]  (!%p3509_p11), %s4498_s2, 16, %s417_s23, [#allocation7]  }
  0x70   : > { %s3145_s17 = scalar_lea.hbm %s4509_s13, 16 }
  0x71   : > { %p3146_p4 = scmp.ne.s32.totalorder %s4509_s13, %s3145_s17  ;;  %p3152_p7 = scmp.lt.u32.totalorder %s3145_s17, %s4509_s13 }
  0x73   : > { %p3148_p6 = pnand %p3146_p4, %p3119_p12 }
  0x75   : > { %p3149_p1 = pneg %p3148_p6 }
  0x77   : > { %p3154_p5 = pnand %p3152_p7, %p3149_p1 }
  0x79   : > { %3157 = shalt.err (!%p3154_p5)
}
  0x7a   : > { %s3158_s23 = scalar_lea.vmem %s3505_s19, 16  ;;  %s3165_s9 = scalar_lea.vmem %s3505_s19, 32 }
  0x7b   : > { %p3159_p8 = scmp.ne.s32.totalorder %s3505_s19, %s3158_s23  ;;  %p3166_p13 = scmp.lt.s32.totalorder %s3505_s19, %s3505_s19 }
  0x7c   : > { %p3167_p2 = scmp.lt.s32.totalorder %s3165_s9, %s3158_s23 }
  0x7d   : > { %p3161_p9 = pnand %p3159_p8, %p3119_p12 }
  0x7e   : > { %p3168_p3 = por %p3167_p2, %p3166_p13 }
  0x7f   : > { %p3162_p0 = pneg %p3161_p9 }
  0x81   : > { %p3169_p10 = pnand %p3168_p3, %p3162_p0 }
  0x83   : > { %3172 = shalt.err (!%p3169_p10)
}
  0x84   : > { %2882 = dma.hbm_to_vmem [thread:$0]  (!%p3509_p11), %s4509_s13, 16, %s3505_s19, [#allocation15]  }
  0x85   : > { %s3173_s8 = scalar_lea.hbm %s3517_s20, 16  ;;  %p4550_p4 = scmp.ne.s32.totalorder %s4543_s25, 0 }
  0x86   : > { %p3174_p12 = scmp.ne.s32.totalorder %s3517_s20, %s3173_s8  ;;  %s3178_s24 = scalar_lea.hbm %s4502_s6, 32 }
  0x87   : > { %p3179_p7 = scmp.lt.u32.totalorder %s3517_s20, %s4502_s6  ;;  %p3180_p5 = scmp.lt.u32.totalorder %s3178_s24, %s3173_s8 }
  0x88   : > { %p3176_p6 = pnand %p3174_p12, %p4550_p4  ;;  %p3182_p9 = scmp.lt.u32.totalorder %s3173_s8, %s3517_s20 }
  0x89   : > { %p3181_p8 = por %p3180_p5, %p3179_p7 }
  0x8a   : > { %p3177_p1 = pneg %p3176_p6 }
  0x8b   : > { %p3183_p0 = por %p3182_p9, %p3181_p8 }
  0x8d   : > { %p3184_p13 = pnand %p3183_p0, %p3177_p1 }
  0x8f   : > { %3187 = shalt.err (!%p3184_p13)
}
  0x90   : > { %s3188_s19 = scalar_lea.vmem %s3520_s27, 16  ;;  %s3285_s1 = smov [#allocation10]  }
  0x91   : > { %p3189_p11 = scmp.ne.s32.totalorder %s3520_s27, %s3188_s19  ;;  %s3193_s23 = sshll.u32 %s3285_s1, 4  ;;  %s3194_s23 = int_to_ptr.vmem [resolvable:$false] %s3193_s23 }
  0x92   : > { %s3195_s9 = scalar_lea.vmem %s3194_s23, 32  ;;  %p3196_p10 = scmp.lt.s32.totalorder %s3520_s27, %s3194_s23 }
  0x93   : > { %p3191_p2 = pnand %p3189_p11, %p4550_p4  ;;  %p3197_p12 = scmp.lt.s32.totalorder %s3195_s9, %s3188_s19 }
  0x95   : > { %p3192_p3 = pneg %p3191_p2  ;;  %p3198_p6 = por %p3197_p12, %p3196_p10 }
  0x97   : > { %p3199_p7 = pnand %p3198_p6, %p3192_p3 }
  0x99   : > { %3202 = shalt.err (!%p3199_p7)
}
  0x9a   : > { %p4551_p1 = scmp.ne.s32.totalorder %s4541_s18, 0  ;;  %s3596_s8 = scalar_lea.hbm %s4506_s10, %s3421_s21 }
  0x9b   : > { %s526_s29 = scalar_lea.vmem [#allocation13], %s3405_s22  ;;  %s3203_s24 = scalar_lea.hbm %s3596_s8, 16 }
  0x9c   : > { %2889 = dma.hbm_to_vmem [thread:$0]  (!%p4551_p1), %s3517_s20, 16, %s3520_s27, %s3425_s15  }
  0x9d   : > { %s533_s17 = sshll.u32 %s526_s29, 4  ;;  %p3204_p5 = scmp.ne.s32.totalorder %s3596_s8, %s3203_s24  ;;  %s534_s17 = int_to_ptr.vmem [resolvable:$true] %s533_s17 }
  0x9e   : > { %s3208_s15 = scalar_lea.hbm %s4506_s10, 32  ;;  %p3209_p0 = scmp.lt.u32.totalorder %s3596_s8, %s4506_s10 }
  0x9f   : > { %p3206_p8 = pnand %p3204_p5, %p4550_p4  ;;  %p3210_p13 = scmp.lt.u32.totalorder %s3208_s15, %s3203_s24 }
  0xa0   : > { %p3212_p2 = scmp.lt.u32.totalorder %s3203_s24, %s3596_s8 }
  0xa1   : > { %p3207_p9 = pneg %p3206_p8  ;;  %p3211_p11 = por %p3210_p13, %p3209_p0 }
  0xa3   : > { %p3213_p3 = por %p3212_p2, %p3211_p11 }
  0xa5   : > { %p3214_p10 = pnand %p3213_p3, %p3207_p9 }
  0xa7   : > { %3217 = shalt.err (!%p3214_p10)
}
  0xa8   : > { %s3218_s21 = scalar_lea.vmem %s534_s17, 16  ;;  %s3286_s22 = smov [#allocation13]  }
  0xa9   : > { %p3219_p12 = scmp.ne.s32.totalorder %s534_s17, %s3218_s21  ;;  %s3223_s19 = sshll.u32 %s3286_s22, 4  ;;  %s3224_s19 = int_to_ptr.vmem [resolvable:$false] %s3223_s19 }
  0xaa   : > { %s3225_s1 = scalar_lea.vmem %s3224_s19, 32  ;;  %p3226_p5 = scmp.lt.s32.totalorder %s534_s17, %s3224_s19 }
  0xab   : > { %p3221_p6 = pnand %p3219_p12, %p4550_p4  ;;  %p3227_p8 = scmp.lt.s32.totalorder %s3225_s1, %s3218_s21 }
  0xad   : > { %p3222_p7 = pneg %p3221_p6  ;;  %p3228_p1 = por %p3227_p8, %p3226_p5 }
  0xaf   : > { %p3229_p0 = pnand %p3228_p1, %p3222_p7 }
  0xb1   : > { %3232 = shalt.err (!%p3229_p0)
}
  0xb2   : > { %p4552_p13 = scmp.ne.s32.totalorder %s4541_s18, 0  ;;  %p4553_p9 = scmp.ne.s32.totalorder %s4548_s12, 0 }
  0xb4   : > { %2895 = dma.hbm_to_vmem [thread:$0]  (!%p4552_p13), %s3596_s8, 16, %s534_s17, %s3464_s14  }
  0xb5   : > { %550 = sbr.rel (%p4553_p9) target bundleno = 1990 (0x7c6), region = 76 }
  0xbc   : > { %p4554_p4 = scmp.eq.s32.totalorder %s3485_s5, 0 }
  0xbe   : > { %3250 = dma.done.wait (%p4554_p4), [#allocation7], 16   ;;  %p4555_p11 = pmov %p4554_p4 }
  0xbf   : > { %s556_s25 = sand.u32 1, %s3485_s5   ;;  %s3625_s23 = sand.u32 1, %s3271_s30  }
  0xc0   : > { %3252 = vsyncadd (%p4555_p11), [#allocation7], 4294967280  ;;  %s2751_s18 = sshll.u32 %s3625_s23, 2  ;;  %s557_s9 = scalar_lea.sflag [#allocation9], %s556_s25 }
  0xc1   : > { %s3628_s11 = scalar_lea.vmem [#allocation8], %s2751_s18  ;;  %p4556_p1 = scmp.ne.s32.totalorder %s4547_s0, 0 }
  0xc3   : > { %3254 = dma.done.wait (%p4556_p1), %s557_s9, 80  }
  0xc4   : > { %3256 = vsyncadd (%p4556_p1), %s557_s9, 4294967216  ;;  %s568_s14 = scalar_lea.vmem [#allocation10], %s3625_s23  ;;  %s574_s12 = scalar_lea.sflag [#allocation12], %s556_s25 }
  0xc5   : > { %3258 = dma.done.wait (%p4556_p1), %s574_s12, 32  }
  0xc6   : > { %3260 = vsyncadd (%p4556_p1), %s574_s12, 4294967264  ;;  %p4557_p2 = pmov %p4554_p4 }
  0xc8   : > { %3262 = dma.done.wait (%p4557_p2), [#allocation15], 16   ;;  %p4558_p3 = pmov %p4557_p2 }
  0xc9   : > { %p663_p10 = scmp.lt.s32.totalorder %s3485_s5, 1  ;;  %s4559_s18 = sld [smem:[#allocation39_spill]] }
  0xca   : > { %3264 = vsyncadd (%p4558_p3), [#allocation15], 4294967280  ;;  %s4560_s24 = sld [smem:[#allocation40_spill]]  ;;  %p4561_p12 = scmp.ne.s32.totalorder %s3485_s5, 0 }
  0xcb   : > { %s3647_s29 = scalar_select %p663_p10, %s3485_s5, 1 }
  0xcc   : > { %690 = sbr.rel (%p4561_p12) target bundleno = 434 (0x1b2), region = 104  ;;  %vm754_vm0 = vcmask (!%p4561_p12), 523264   ;;  %s4562_s28 = sld [smem:[#allocation36_spill]] (!%p4561_p12)  ;;  %vm706_vm1 = vcmask (!%p4561_p12), 1041408   ;;  %v3287_v1 = vmov (!%p4561_p12), 0.0   ;;  %vm3288_vm2 = vmmov (!%p4561_p12), 0  }
  0xcd   : > { %s665_s0 = scalar_lea.vmem %s4499_s3, %s3647_s29  ;;  %s2792_s16 = sshll.u32 %s3647_s29, 4  ;;  %2814 = vmatprep.subr.bf16.mxu0 (!%p4561_p12), %v3287_v1  ;;  %755 = vst.msk [vmem:[#allocation3] sm:$0xff] (!%p4561_p12), %vm754_vm0, %v3287_v1  ;;  %756 = vst.msk [vmem:[#allocation3 + $0x8] sm:$0xff] (!%p4561_p12), %vm754_vm0, %v3287_v1  ;;  %2816 = vmatprep.mubr.msk.bf16.mxu0 (!%p4561_p12), %vm3288_vm2, %v3287_v1  ;;  %vm702_vm3 = vcmask (!%p4561_p12), 31744   ;;  %v2762_v6 = vld [vmem:[#allocation6] ss:$0 sm:$0xff] (!%p4561_p12) }
  0xce   : > { %s3657_s20 = scalar_lea.vmem %s4500_s4, %s2792_s16  ;;  %s2793_s27 = sshll.u32 %s3647_s29, 5  ;;  %757 = vst.msk [vmem:[#allocation3 + $0x10] sm:$0xff] (!%p4561_p12), %vm754_vm0, %v3287_v1  ;;  %758 = vst.msk [vmem:[#allocation3 + $0x18] sm:$0xff] (!%p4561_p12), %vm754_vm0, %v3287_v1  ;;  %vm751_vm4 = vcmask (!%p4561_p12), 261120  }
  0xcf   : > { %s3663_s19 = scalar_lea.vmem %s4503_s7, %s2793_s27  ;;  %s3668_s9 = scalar_lea.vmem %s4559_s18, %s2792_s16 }
  0xd0   : > { %s3673_s8 = scalar_lea.vmem %s4560_s24, %s2793_s27  ;;  %s4563_s21 = sld [smem:[#allocation35_spill]] (!%p4561_p12) }
  0xd2   : > { %v693_v0 = vld [vmem:[%s4562_s28] sm:$0x3] (!%p4561_p12) }
  0xd3   : > { %v708_v2 = vsel %vm706_vm1, %v693_v0, 0 }
  0xd4   : > { %2815 = vmatpush3.bf16.msra.mxu0 %v708_v2 }
  0xd6   : > { %v691_v3 = vld [vmem:[%s4563_s21] sm:$0xff]  ;;  %v692_v4 = vld [vmem:[%s4563_s21 + $0x8] sm:$0xff] }
  0xd7   : > { %v694_v5 = vpack.c.bf16 %v692_v4, %v691_v3 }
  0xd9   : > { %2817 = vmatmul.mubr.msk.bf16.vlgmr.msra.gmra.mrb[0].mxu0 %vm702_vm3, %v694_v5 }
 0x1ac   : > { %v744_v7 = vpop.f32.mrb[0].mxu0 }
 0x1ad   : > { %v745_v8 = vadd.f32 %v2762_v6, %v744_v7  ;;  %v2818_v9 = vpop.f32.mrb[1].mxu0 }
 0x1ae   : > { %v747_v10 = vpop.f32.mrb[2].mxu0 }
 0x1af   : > { %752 = vst.msk [vmem:[#allocation2] sm:$0xff] %vm751_vm4, %v745_v8  ;;  %v748_v11 = vadd.f32 %v2762_v6, %v747_v10  ;;  %v2819_v12 = vpop.f32.mrb[3].mxu0 }
 0x1b1   : > { %753 = vst.msk [vmem:[#allocation2 + $0x8] sm:$0xff] %vm751_vm4, %v748_v11 }
 0x1b2 PF: > { %vm763_vm5 = vcmask 261120   ;;  %v2943_v19 = vld [vmem:[%s3657_s20] sm:$0xff]   ;;  %v4524_v20 = vmov 0.0   ;;  %vm3290_vm6 = vmmov 0   ;;  %v2944_v21 = vld [vmem:[%s3657_s20 + $0x8] sm:$0xff]   ;;  %v2947_v38 = vld [vmem:[%s3663_s19 + $0x10] sm:$0xff]   ;;  %v855_v40 = vlaneseq }
 0x1b3   : > { %2820 = vmatprep.subr.bf16.mxu0 %v4524_v20  ;;  %2824 = vmatprep.mubr.msk.bf16.mxu0 %vm3290_vm6, %v4524_v20  ;;  %v2764_v31 = vld [vmem:[%s665_s0] ss:$0 sm:$0xff]  ;;  %v2946_v37 = vld [vmem:[%s3663_s19 + $0x8] sm:$0xff]   ;;  %v2948_v39 = vld [vmem:[%s3663_s19 + $0x18] sm:$0xff]   ;;  %vm849_vm7 = vcmask 523264   ;;  %vm2260_vm12 = vcmask 1048064  }
 0x1b4   : > { %2821 = vmatpush3.bf16.msra.mxu0 %v2943_v19  ;;  %2828 = vmatprep.subr.bf16.mxu1 %v4524_v20  ;;  %v2945_v36 = vld [vmem:[%s3663_s19] sm:$0xff]   ;;  %v3713_v41 = vshrl.u32 %v855_v40, 7  ;;  %v852_v47 = vld [vmem:[%s3628_s11] sm:$0xf]  ;;  %s4566_s11 = scalar_lea.vmem [#allocation11], %s3625_s23  ;;  %vm2341_vm13 = vcmask 1041409  }
 0x1b5   : > { %2822 = vmatprep.subr.bf16.mxu0 %v4524_v20  ;;  %2836 = vmatprep.mubr.msk.bf16.mxu1 %vm3290_vm6, %v4524_v20  ;;  %v2768_v9 = vld [vmem:[%s568_s14] ss:$0 sm:$0xff]  ;;  %s3292_s14 = smov 64   ;;  %vm2343_vm14 = vcmask 1042434   ;;  %vm2345_vm15 = vcmask 1043459   ;;  %vm2347_vm0 = vcmask 1044484  }
 0x1b6   : > { %v759_v13 = vld [vmem:[#allocation2] sm:$0xff]  ;;  %2829 = vmatpush3.bf16.msra.mxu1 %v2945_v36  ;;  %v3720_v44 = vsub.s32 0, %v3713_v41  ;;  %v3723_v45 = vsub.s32 1, %v3713_v41  ;;  %v3731_v49 = vsub.s32 2, %v3713_v41  ;;  %v3736_v52 = vsub.s32 3, %v3713_v41  ;;  %p2785_p6 = scmp.ne.s32.totalorder %s3485_s5, 1 }
 0x1b7   : > { %v761_v15 = vmul.f32 %v759_v13, %v759_v13  ;;  %2830 = vmatprep.subr.bf16.mxu1 %v4524_v20  ;;  %vm2349_vm1 = vcmask 1045509   ;;  %vm2351_vm2 = vcmask 1046534   ;;  %vm2353_vm3 = vcmask 1047559   ;;  %s4594_s0 = sld [smem:[#allocation41_spill]] (!%p2785_p6) }
 0x1b8   : > { %v760_v14 = vld [vmem:[#allocation2 + $0x8] sm:$0xff]  ;;  %2823 = vmatpush3.bf16.msra.mxu0 %v2944_v21  ;;  %v858_v50 = vrot.slane %v852_v47, %v3720_v44  ;;  %v866_v51 = vrot.slane %v852_v47, %v3723_v45  ;;  %v876_v53 = vrot.slane %v852_v47, %v3731_v49  ;;  %v886_v60 = vrot.slane %v852_v47, %v3736_v52 }
 0x1b9   : > { %v762_v16 = vmul.f32 %v760_v14, %v760_v14  ;;  %v764_v17 = vsel %vm763_vm5, %v761_v15, 0.0  ;;  %2840 = vmatprep.subr.bf16.mxu0 %v4524_v20  ;;  %vm3294_vm4 = vmmov (!%p2785_p6), 0  }
 0x1ba   : > { %765 = vadd.xlane.f32.xlu0 %v764_v17  ;;  %2831 = vmatpush3.bf16.msra.mxu1 %v2946_v37 }
 0x1bb   : > { %v767_v18 = vsel %vm763_vm5, %v762_v16, 0.0  ;;  %2832 = vmatprep.subr.bf16.mxu1 %v4524_v20 }
 0x1be   : > { %768 = vadd.xlane.f32.xlu0 %v767_v18  ;;  %2833 = vmatpush3.bf16.msra.mxu1 %v2947_v38 }
 0x1bf   : > { %2834 = vmatprep.subr.bf16.mxu1 %v4524_v20 }
 0x1c2   : > { %2835 = vmatpush3.bf16.msra.mxu1 %v2948_v39 }
 0x247   : > { %v766_v22 = vpop.xlane.xlu0 %765 }
 0x248   : > { %v771_v23 = vmul.f32 0.03125, %v766_v22 }
 0x24a   : > { %v773_v24 = vadd.f32 1e-05, %v771_v23 }
 0x24b   : > { %v769_v25 = vpop.xlane.xlu0 %768 }
 0x24c   : > { %2953 = vrsqrt.f32 %v773_v24  ;;  %v772_v26 = vmul.f32 0.03125, %v769_v25 }
 0x24e   : > { %v774_v27 = vadd.f32 1e-05, %v772_v26 }
 0x250   : > { %2955 = vrsqrt.f32 %v774_v27 }
 0x256   : > { %v2954_v28 = vpop.eup %2953 }
 0x257   : > { %v777_v29 = vmul.f32 %v2954_v28, %v759_v13  ;;  %v2776_v28 = vld [vmem:[%s4566_s11] ss:$0 sm:$0xff] }
 0x259   : > { %v786_v33 = vmul.f32 %v2764_v31, %v777_v29 }
 0x25a   : > { %v2956_v30 = vpop.eup %2955 }
 0x25b   : > { %v778_v32 = vmul.f32 %v2956_v30, %v760_v14 }
 0x25d   : > { %v787_v34 = vmul.f32 %v2764_v31, %v778_v32 }
 0x25f   : > { %v792_v35 = vpack.c.bf16 %v787_v34, %v786_v33 }
 0x261   : > { %2825 = vmatmul.mubr.msk.bf16.vlgmr.msra.gmra.mrb[0].mxu0 %vm763_vm5, %v792_v35 }
 0x262   : > { %2848 = vmatprep.mubr.msk.bf16.mxu0 %vm3290_vm6, %v4524_v20  ;;  %vm2564_vm6 = vcmask (!%p2785_p6), 31744  }
 0x334   : > { %v3715_v42 = vpop.f32.mrb[0].mxu0 }
 0x335   : > { %850 = vst.msk [vmem:[#allocation3 + $0x8] sm:$0xff] %vm849_vm7, %v3715_v42  ;;  %v2826_v43 = vpop.f32.mrb[1].mxu0 }
 0x336   : > { %v3725_v46 = vpop.f32.mrb[2].mxu0 }
 0x337   : > { %851 = vst.msk [vmem:[#allocation3 + $0x18] sm:$0xff] %vm849_vm7, %v3725_v46  ;;  %v2827_v48 = vpop.f32.mrb[3].mxu0 }
 0x33c   : > { %v853_v54 = vld [vmem:[#allocation3 + $0x5] sm:$0xff] }
 0x33d   : > { %v861_v55 = vld [vmem:[#allocation3 + $0x6] sm:$0xff]  ;;  %v859_v57 = vmul.f32 %v858_v50, %v853_v54  ;;  %v1296_v54 = vsub.s32 5, %v3713_v41 }
 0x33e   : > { %v871_v56 = vld [vmem:[#allocation3 + $0x7] sm:$0xff]  ;;  %v867_v58 = vmul.f32 %v866_v51, %v861_v55  ;;  %v854_v61 = vld [vmem:[#allocation3 + $0x15] sm:$0xff] }
 0x33f   : > { %v881_v59 = vld [vmem:[#allocation3 + $0x8] sm:$0xff]  ;;  %v862_v62 = vld [vmem:[#allocation3 + $0x16] sm:$0xff]  ;;  %v860_v0 = vmul.f32 %v858_v50, %v854_v61  ;;  %v877_v3 = vmul.f32 %v876_v53, %v871_v56 }
 0x340   : > { %v872_v63 = vld [vmem:[#allocation3 + $0x17] sm:$0xff]  ;;  %v868_v1 = vmul.f32 %v866_v51, %v862_v62  ;;  %v869_v2 = vadd.f32 %v867_v58, %v859_v57  ;;  %v887_v8 = vmul.f32 %v886_v60, %v881_v59  ;;  %v1284_v51 = vsub.s32 4, %v3713_v41 }
 0x341   : > { %v882_v4 = vld [vmem:[#allocation3 + $0x18] sm:$0xff]  ;;  %v878_v6 = vmul.f32 %v876_v53, %v872_v63  ;;  %v1308_v59 = vsub.s32 6, %v3713_v41  ;;  %v1320_v62 = vsub.s32 7, %v3713_v41 }
 0x342   : > { %v870_v5 = vadd.f32 %v868_v1, %v860_v0  ;;  %v879_v7 = vadd.f32 %v877_v3, %v869_v2  ;;  %v888_v11 = vmul.f32 %v886_v60, %v882_v4  ;;  %v3291_v0 = vmov 1966171168  }
 0x343   : > { %v1049_v1 = vunpack.c.l.s4 %v3291_v0 }
 0x344   : > { %v880_v10 = vadd.f32 %v878_v6, %v870_v5  ;;  %v889_v12 = vadd.f32 %v887_v8, %v879_v7 }
 0x345   : > { %v1050_v6 = vunpack.c.0.s8 %v1049_v1 }
 0x346   : > { %v890_v13 = vadd.f32 %v888_v11, %v880_v10  ;;  %v898_v14 = vadd.f32 %v2768_v9, %v889_v12 }
 0x348   : > { %v899_v15 = vadd.f32 %v2768_v9, %v890_v13  ;;  %v2769_v16 = vmul.f32 -1.442695, %v898_v14 }
 0x34a   : > { %2957 = vpow2.f32 %v2769_v16  ;;  %v2770_v17 = vmul.f32 -1.442695, %v899_v15  ;;  %v3814_v16 = vsub.s32 %v1050_v6, %v3713_v41 }
 0x34c   : > { %2959 = vpow2.f32 %v2770_v17 }
 0x354   : > { %v2958_v18 = vpop.eup %2957 }
 0x355   : > { %v906_v19 = vadd.f32 1.0, %v2958_v18 }
 0x356   : > { %v2960_v21 = vpop.eup %2959 }
 0x357   : > { %v907_v22 = vadd.f32 1.0, %v2960_v21  ;;  %2961 = vrcp.f32 %v906_v19  ;;  %v1036_v21 = vld [vmem:[%s3668_s9] sm:$0xff] }
 0x359   : > { %2963 = vrcp.f32 %v907_v22 }
 0x361   : > { %v2962_v23 = vpop.eup %2961 }
 0x362   : > { %v3742_v25 = vmul.f32 %v2962_v23, %v898_v14 }
 0x363   : > { %v2964_v24 = vpop.eup %2963 }
 0x364   : > { %4564 = vst [vmem:[#allocation23_spill] sm:$0xff] %v3742_v25  ;;  %v3744_v26 = vmul.f32 %v2964_v24, %v899_v15 }
 0x366   : > { %4565 = vst [vmem:[#allocation24_spill] sm:$0xff] %v3744_v26  ;;  %v922_v27 = vpack.c.bf16 %v3744_v26, %v3742_v25 }
 0x368   : > { %2837 = vmatmul.mubr.msk.bf16.vlgmr.msra.gmra.mrb[0].mxu1 %vm849_vm7, %v922_v27 }
 0x43b   : > { %v984_v29 = vpop.f32.mrb[0].mxu1 }
 0x43c   : > { %v3751_v30 = vadd.f32 %v2776_v28, %v984_v29  ;;  %v2838_v31 = vpop.f32.mrb[1].mxu1  ;;  %v3754_v32 = vrot.slane %v984_v29, %v3720_v44  ;;  %v3766_v39 = vrot.slane %v984_v29, %v3723_v45  ;;  %v3771_v48 = vrot.slane %v984_v29, %v3731_v49 }
 0x43d   : > { %v3756_v33 = vpop.f32.mrb[2].mxu1  ;;  %v3776_v50 = vrot.slane %v984_v29, %v3736_v52  ;;  %v3781_v53 = vrot.slane %v984_v29, %v1284_v51  ;;  %v3786_v58 = vrot.slane %v984_v29, %v1296_v54  ;;  %v3793_v61 = vrot.slane %v984_v29, %v1308_v59 }
 0x43e   : > { %v1006_v34 = vand.u32 2147483647, %v3751_v30  ;;  %v3760_v35 = vadd.f32 %v2776_v28, %v3756_v33  ;;  %1244 = vbcast.lane.b32.xlu0 %v3754_v32, 328  ;;  %1240 = vbcast.lane.b32.xlu1 %v3754_v32, 320  ;;  %v2839_v36 = vpop.f32.mrb[3].mxu1  ;;  %v3800_v3 = vrot.slane %v984_v29, %v1320_v62  ;;  %v3806_v9 = vrot.slane %v3756_v33, %v3723_v45  ;;  %v1037_v45 = vld [vmem:[%s3668_s9 + $0x8] sm:$0xff] }
 0x43f   : > { %v3810_v11 = vrot.slane %v3756_v33, %v3720_v44  ;;  %v1000_v15 = vmax.f32 %v3751_v30, 0.0  ;;  %v3825_v24 = vrot.slane %v3756_v33, %v1284_v51  ;;  %vm1002_vm10 = vcmp.ne.f32.partialorder %v3751_v30, %v3751_v30  ;;  %s4595_s9 = sld [smem:[#allocation42_spill]] (!%p2785_p6) }
 0x440   : > { %v1008_v37 = vsub.f32 0.0, %v1006_v34  ;;  %v1007_v38 = vand.u32 2147483647, %v3760_v35  ;;  %v1040_v28 = vmul.f32 1.442695, %v1037_v45  ;;  %vm1003_vm11 = vcmp.ne.f32.partialorder %v3760_v35, %v3760_v35 }
 0x441   : > { %v1038_v31 = vmul.f32 1.442695, %v1036_v21 }
 0x442   : > { %v1010_v40 = vmul.f32 1.442695, %v1008_v37  ;;  %v1009_v43 = vsub.f32 0.0, %v1007_v38  ;;  %1256 = vbcast.lane.b32.xlu0 %v3766_v39, 328  ;;  %1252 = vbcast.lane.b32.xlu1 %v3766_v39, 320  ;;  %v1001_v38 = vmax.f32 %v3760_v35, 0.0 }
 0x444   : > { %2965 = vpow2.f32 %v1010_v40  ;;  %v1012_v47 = vmul.f32 1.442695, %v1009_v43  ;;  %v3840_v40 = vrot.slane %v3756_v33, %v1296_v54 }
 0x446   : > { %2967 = vpow2.f32 %v1012_v47  ;;  %1268 = vbcast.lane.b32.xlu0 %v3771_v48, 328  ;;  %1264 = vbcast.lane.b32.xlu1 %v3771_v48, 320 }
 0x44a   : > { %1280 = vbcast.lane.b32.xlu0 %v3776_v50, 328  ;;  %1276 = vbcast.lane.b32.xlu1 %v3776_v50, 320 }
 0x44e   : > { %v2966_v55 = vpop.eup %2965  ;;  %1292 = vbcast.lane.b32.xlu0 %v3781_v53, 328  ;;  %1288 = vbcast.lane.b32.xlu1 %v3781_v53, 320 }
 0x44f   : > { %v1014_v56 = vadd.f32 1.0, %v2966_v55  ;;  %v1017_v63 = vmul.f32 -0.5, %v2966_v55  ;;  %v1020_v5 = vand.u32 2147483647, %v2966_v55 }
 0x450   : > { %v2968_v57 = vpop.eup %2967 }
 0x451   : > { %v1023_v60 = vadd.f32 1.0, %v2968_v57  ;;  %2969 = vlog2.f32 %v1014_v56  ;;  %v1026_v2 = vmul.f32 -0.5, %v2968_v57  ;;  %v1018_v4 = vadd.f32 1.0, %v1017_v63 }
 0x452   : > { %1304 = vbcast.lane.b32.xlu0 %v3786_v58, 328  ;;  %1300 = vbcast.lane.b32.xlu1 %v3786_v58, 320  ;;  %v1029_v10 = vand.u32 2147483647, %v2968_v57  ;;  %vm1021_vm8 = vcmp.lt.f32.partialorder %v1020_v5, 0.0004427343  ;;  %v3861_v63 = vrot.slane %v3756_v33, %v3731_v49 }
 0x453   : > { %2971 = vlog2.f32 %v1023_v60  ;;  %v1027_v8 = vadd.f32 1.0, %v1026_v2  ;;  %v1019_v13 = vmul.f32 %v2966_v55, %v1018_v4  ;;  %v3857_v60 = vrot.slane %v3756_v33, %v1308_v59 }
 0x454   : > { %vm3820_vm9 = vcmp.lt.f32.partialorder %v1029_v10, 0.0004427343  ;;  %2973 = vpow2.f32 %v1040_v28  ;;  %v3872_v2 = vrot.slane %v3756_v33, %v1320_v62  ;;  %v3880_v4 = vrot.slane %v3756_v33, %v3736_v52 }
 0x455   : > { %v1028_v19 = vmul.f32 %v2968_v57, %v1027_v8  ;;  %2975 = vpow2.f32 %v1038_v31 }
 0x456   : > { %1316 = vbcast.lane.b32.xlu0 %v3793_v61, 328  ;;  %1312 = vbcast.lane.b32.xlu1 %v3793_v61, 320 }
 0x45a   : > { %1328 = vbcast.lane.b32.xlu0 %v3800_v3, 328  ;;  %1324 = vbcast.lane.b32.xlu1 %v3800_v3, 320 }
 0x45b   : > { %v2970_v7 = vpop.eup %2969 }
 0x45c   : > { %v1016_v12 = vmul.f32 0.6931472, %v2970_v7 }
 0x45d   : > { %v2972_v14 = vpop.eup %2971 }
 0x45e   : > { %v1025_v17 = vmul.f32 0.6931472, %v2972_v14  ;;  %1592 = vbcast.lane.b32.xlu0 %v3806_v9, 320  ;;  %1580 = vbcast.lane.b32.xlu1 %v3810_v11, 320  ;;  %v1022_v18 = vsel %vm1021_vm8, %v1019_v13, %v1016_v12  ;;  %v2974_v49 = vpop.eup %2973 }
 0x45f   : > { %v1032_v22 = vadd.f32 %v1022_v18, %v1000_v15  ;;  %v3887_v10 = vsub.f32 0.0, %v2974_v49 }
 0x460   : > { %v1031_v27 = vsel %vm3820_vm9, %v1028_v19, %v1025_v17 }
 0x461   : > { %v1034_v29 = vsel %vm1002_vm10, %v3751_v30, %v1032_v22  ;;  %v1033_v30 = vadd.f32 %v1031_v27, %v1001_v38 }
 0x462   : > { %1632 = vbcast.lane.b32.xlu0 %v3825_v24, 328  ;;  %1584 = vbcast.lane.b32.xlu1 %v3810_v11, 328  ;;  %v3835_v34 = vmul.f32 %v1034_v29, %v3742_v25  ;;  %v1047_v36 = vcombine.high %v1034_v29, %v1034_v29  ;;  %v1054_v37 = vrot.slane %v1034_v29, %v3814_v16 }
 0x463   : > { %v3864_v0 = vsel %vm1003_vm11, %v3760_v35, %v1033_v30  ;;  %v2976_v35 = vpop.eup %2975 }
 0x464   : > { %v1061_v43 = vrot.slane %v1047_v36, %v3814_v16  ;;  %v1062_v47 = vcombine.high %v1054_v37, %v1054_v37  ;;  %v1070_v51 = vrot.slane %v1054_v37, %v3814_v16  ;;  %v3846_v55 = vrot.slane %v3835_v34, %v3814_v16 }
 0x465   : > { %v1394_v59 = vrot.slane %v3864_v0, %v3814_v16  ;;  %v1387_v62 = vcombine.high %v3864_v0, %v3864_v0  ;;  %v3889_v12 = vsub.f32 0.0, %v2976_v35 }
 0x466   : > { %1644 = vbcast.lane.b32.xlu0 %v3840_v40, 328  ;;  %1596 = vbcast.lane.b32.xlu1 %v3806_v9, 328  ;;  %v1063_v56 = vcombine.high %v1061_v43, %v1061_v43  ;;  %v1077_v54 = vrot.slane %v1061_v43, %v3814_v16  ;;  %v1084_v57 = vrot.slane %v1062_v47, %v3814_v16 }
 0x467   : > { %v1410_v5 = vrot.slane %v1394_v59, %v3814_v16  ;;  %v1092_v6 = vcombine.high %v1070_v51, %v1070_v51  ;;  %v1402_v41 = vcombine.high %v1394_v59, %v1394_v59  ;;  %v1099_v52 = vrot.slane %v1070_v51, %v3720_v44 }
 0x468   : > { %v1091_v1 = vrot.slane %v1063_v56, %v3814_v16  ;;  %v1094_v7 = vcombine.high %v1084_v57, %v1084_v57  ;;  %v1093_v8 = vcombine.high %v1077_v54, %v1077_v54  ;;  %v1103_v14 = vrot.slane %v1084_v57, %v3720_v44 }
 0x469   : > { %v3893_v33 = vrot.slane %v1410_v5, %v3720_v44  ;;  %v1107_v15 = vrot.slane %v1092_v6, %v3720_v44  ;;  %v1424_v17 = vrot.slane %v1402_v41, %v3814_v16  ;;  %v1401_v45 = vrot.slane %v1387_v62, %v3814_v16 }
 0x46a   : > { %1656 = vbcast.lane.b32.xlu0 %v3857_v60, 328  ;;  %1604 = vbcast.lane.b32.xlu1 %v3861_v63, 320  ;;  %v1095_v13 = vcombine.high %v1091_v1, %v1091_v1  ;;  %v1111_v18 = vrot.slane %v1094_v7, %v3720_v44  ;;  %v1115_v19 = vrot.slane %v1077_v54, %v3720_v44 }
 0x46b   : > { %v1432_v21 = vcombine.high %v1410_v5, %v1410_v5  ;;  %v1119_v22 = vrot.slane %v1091_v1, %v3720_v44  ;;  %v1123_v23 = vrot.slane %v1093_v8, %v3720_v44  ;;  %v3907_v28 = vmul.f32 %v1099_v52, %v3889_v12 }
 0x46c   : > { %v1127_v27 = vrot.slane %v1095_v13, %v3720_v44  ;;  %v3910_v29 = vmul.f32 %v1099_v52, %v3887_v10  ;;  %v3913_v31 = vmul.f32 %v1103_v14, %v3889_v12  ;;  %v1477_v36 = vmul.f32 %v3893_v33, %v3887_v10 }
 0x46d   : > { %v3918_v37 = vmul.f32 %v1103_v14, %v3887_v10  ;;  %v3921_v38 = vmul.f32 %v1107_v15, %v3889_v12  ;;  %v3924_v43 = vmul.f32 %v1107_v15, %v3887_v10  ;;  %v3927_v47 = vmul.f32 %v1111_v18, %v3889_v12 }
 0x46e   : > { %1668 = vbcast.lane.b32.xlu0 %v3872_v2, 328  ;;  %1608 = vbcast.lane.b32.xlu1 %v3861_v63, 328  ;;  %v3930_v30 = vmul.f32 %v1111_v18, %v3887_v10  ;;  %v3933_v51 = vmul.f32 %v1115_v19, %v3889_v12  ;;  %v3936_v56 = vmul.f32 %v1115_v19, %v3887_v10  ;;  %v1494_v62 = vmul.f32 1.442695, %v1477_v36 }
 0x46f   : > { %v3941_v54 = vmul.f32 %v1119_v22, %v3889_v12  ;;  %v3944_v57 = vmul.f32 %v1119_v22, %v3887_v10  ;;  %v3947_v1 = vmul.f32 %v1123_v23, %v3889_v12  ;;  %v3950_v59 = vrot.slane %v1424_v17, %v3720_v44 }
 0x470   : > { %v3953_v49 = vmul.f32 %v1123_v23, %v3887_v10  ;;  %v3956_v35 = vmul.f32 %v1127_v27, %v3889_v12  ;;  %v3959_v5 = vmul.f32 %v1127_v27, %v3887_v10  ;;  %v1417_v6 = vrot.slane %v1401_v45, %v3814_v16 }
 0x471   : > { %v3966_v41 = vrot.slane %v3846_v55, %v3814_v16  ;;  %v1479_v7 = vmul.f32 %v3950_v59, %v3887_v10  ;;  %v3971_v8 = vrot.slane %v1432_v21, %v3720_v44  ;;  %v1403_v13 = vcombine.high %v1401_v45, %v1401_v45 }
 0x472   : > { %2186 = vbcast.lane.b32.xlu0 %v3810_v11, 344  ;;  %1616 = vbcast.lane.b32.xlu1 %v3880_v4, 320  ;;  %v1200_v52 = vcombine.high %v3846_v55, %v3846_v55  ;;  %v1185_v14 = vcombine.high %v3835_v34, %v3835_v34  ;;  %v3980_v15 = vrot.slane %v1417_v6, %v3720_v44  ;;  %2977 = vpow2.f32 %v1494_v62 }
 0x473   : > { %v1434_v18 = vcombine.high %v1424_v17, %v1424_v17  ;;  %v1045_v19 = vmul.f32 %v3864_v0, %v3744_v26  ;;  %v1498_v21 = vmul.f32 1.442695, %v1479_v7  ;;  %v1481_v45 = vmul.f32 %v3971_v8, %v3887_v10 }
 0x474   : > { %v3987_v55 = vrot.slane %v1200_v52, %v3814_v16  ;;  %v1431_v34 = vrot.slane %v1403_v13, %v3814_v16  ;;  %v1485_v17 = vmul.f32 %v3980_v15, %v3887_v10  ;;  %v1199_v22 = vrot.slane %v1185_v14, %v3814_v16 }
 0x475   : > { %v1532_v0 = vrot.slane %v1045_v19, %v3814_v16  ;;  %2979 = vpow2.f32 %v1498_v21  ;;  %v1502_v23 = vmul.f32 1.442695, %v1481_v45  ;;  %v3997_v27 = vrot.slane %v1434_v18, %v3720_v44 }
 0x476   : > { %2194 = vbcast.lane.b32.xlu0 %v3806_v9, 344  ;;  %1620 = vbcast.lane.b32.xlu1 %v3880_v4, 328  ;;  %v1525_v36 = vcombine.high %v1045_v19, %v1045_v19  ;;  %v4000_v62 = vrot.slane %v1199_v22, %v3814_v16  ;;  %v1201_v7 = vcombine.high %v1199_v22, %v1199_v22  ;;  %v1510_v14 = vmul.f32 1.442695, %v1485_v17 }
 0x477   : > { %v1540_v13 = vcombine.high %v1532_v0, %v1532_v0  ;;  %v4003_v52 = vrot.slane %v1532_v0, %v3814_v16  ;;  %v1459_v21 = vrot.slane %v1431_v34, %v3720_v44  ;;  %v1433_v18 = vcombine.high %v1417_v6, %v1417_v6 }
 0x478   : > { %v1539_v20 = vrot.slane %v1525_v36, %v3814_v16  ;;  %v4010_v19 = vrot.slane %v1201_v7, %v3814_v16  ;;  %2981 = vpow2.f32 %v1502_v23  ;;  %v1483_v45 = vmul.f32 %v3997_v27, %v3887_v10 }
 0x479   : > { %v4015_v22 = vrot.slane %v1540_v13, %v3814_v16  ;;  %v1463_v6 = vrot.slane %v1433_v18, %v3720_v44  ;;  %2983 = vpow2.f32 %v1510_v14  ;;  %v1435_v23 = vcombine.high %v1431_v34, %v1431_v34 }
 0x47a   : > { %2202 = vbcast.lane.b32.xlu0 %v3861_v63, 344  ;;  %1628 = vbcast.lane.b32.xlu1 %v3825_v24, 320  ;;  %v4018_v0 = vrot.slane %v1539_v20, %v3814_v16  ;;  %v1541_v26 = vcombine.high %v1539_v20, %v1539_v20  ;;  %v1506_v17 = vmul.f32 1.442695, %v1483_v45  ;;  %v1476_v20 = vmul.f32 %v3893_v33, %v3889_v12 }
 0x47b   : > { %v1467_v18 = vrot.slane %v1435_v23, %v3720_v44 }
 0x47c   : > { %v2978_v36 = vpop.eup %2977  ;;  %v4025_v7 = vrot.slane %v1541_v26, %v3814_v16  ;;  %2985 = vpow2.f32 %v1506_v17  ;;  %v1492_v26 = vmul.f32 1.442695, %v1476_v20  ;;  %v1478_v16 = vmul.f32 %v3950_v59, %v3889_v12 }
 0x47d   : > { %v1491_v34 = vmul.f32 %v1467_v18, %v3887_v10 }
 0x47e   : > { %2210 = vbcast.lane.b32.xlu0 %v3880_v4, 344  ;;  %1640 = vbcast.lane.b32.xlu1 %v3840_v40, 320  ;;  %v1496_v45 = vmul.f32 1.442695, %v1478_v16 }
 0x47f   : > { %v2980_v13 = vpop.eup %2979 }
 0x482   : > { %2218 = vbcast.lane.b32.xlu0 %v3825_v24, 344  ;;  %1652 = vbcast.lane.b32.xlu1 %v3857_v60, 320  ;;  %v2982_v14 = vpop.eup %2981 }
 0x483   : > { %v2984_v33 = vpop.eup %2983 }
 0x486   : > { %2226 = vbcast.lane.b32.xlu0 %v3840_v40, 344  ;;  %1664 = vbcast.lane.b32.xlu1 %v3872_v2, 320  ;;  %v2986_v17 = vpop.eup %2985 }
 0x48a   : > { %2234 = vbcast.lane.b32.xlu0 %v3857_v60, 344  ;;  %2182 = vbcast.lane.b32.xlu1 %v3810_v11, 336  ;;  %v1487_v11 = vmul.f32 %v1459_v21, %v3887_v10 }
 0x48e   : > { %2190 = vbcast.lane.b32.xlu1 %v3806_v9, 336  ;;  %1744 = vrot.lane.b32.xlu0 %v2978_v36, %s3292_s14  ;;  %v1514_v9 = vmul.f32 1.442695, %v1487_v11  ;;  %v1489_v36 = vmul.f32 %v1463_v6, %v3887_v10  ;;  %v1522_v11 = vmul.f32 1.442695, %v1491_v34 }
 0x490   : > { %2987 = vpow2.f32 %v1514_v9 }
 0x491   : > { %2989 = vpow2.f32 %v1492_v26  ;;  %v4059_v26 = vrot.slane %v3966_v41, %v3720_v44 }
 0x492   : > { %2198 = vbcast.lane.b32.xlu1 %v3861_v63, 336  ;;  %1748 = vrot.lane.b32.xlu0 %v2980_v13, %s3292_s14  ;;  %v1518_v63 = vmul.f32 1.442695, %v1489_v36 }
 0x494   : > { %2991 = vpow2.f32 %v1518_v63 }
 0x495   : > { %2993 = vpow2.f32 %v1496_v45 }
 0x496   : > { %2206 = vbcast.lane.b32.xlu1 %v3880_v4, 336  ;;  %1752 = vrot.lane.b32.xlu0 %v2982_v14, %s3292_s14  ;;  %v1480_v4 = vmul.f32 %v3971_v8, %v3889_v12  ;;  %2995 = vpow2.f32 %v1522_v11  ;;  %v1482_v8 = vmul.f32 %v3997_v27, %v3889_v12  ;;  %v1488_v27 = vmul.f32 %v1463_v6, %v3889_v12 }
 0x497   : > { %v4070_v6 = vrot.slane %v3987_v55, %v3720_v44  ;;  %v1230_v11 = vcombine.high %v3966_v41, %v3966_v41 }
 0x498   : > { %v1500_v10 = vmul.f32 1.442695, %v1480_v4  ;;  %v1504_v20 = vmul.f32 1.442695, %v1482_v8  ;;  %v1516_v16 = vmul.f32 1.442695, %v1488_v27 }
 0x49a   : > { %2214 = vbcast.lane.b32.xlu1 %v3825_v24, 336  ;;  %1760 = vrot.lane.b32.xlu0 %v2984_v33, %s3292_s14  ;;  %v1484_v24 = vmul.f32 %v3980_v15, %v3889_v12  ;;  %v2988_v59 = vpop.eup %2987  ;;  %2997 = vpow2.f32 %v1500_v10  ;;  %v1486_v15 = vmul.f32 %v1459_v21, %v3889_v12  ;;  %v1490_v21 = vmul.f32 %v1467_v18, %v3889_v12 }
 0x49b   : > { %v2990_v13 = vpop.eup %2989 }
 0x49c   : > { %v1508_v23 = vmul.f32 1.442695, %v1484_v24  ;;  %v1520_v4 = vmul.f32 1.442695, %v1490_v21  ;;  %v4081_v24 = vrot.slane %v1230_v11, %v3720_v44 }
 0x49e   : > { %2222 = vbcast.lane.b32.xlu1 %v3840_v40, 336  ;;  %1756 = vrot.lane.b32.xlu0 %v2986_v17, %s3292_s14  ;;  %v2992_v40 = vpop.eup %2991  ;;  %2999 = vpow2.f32 %v1508_v23 }
 0x49f   : > { %v2994_v9 = vpop.eup %2993  ;;  %3001 = vpow2.f32 %v1504_v20 }
 0x4a0   : > { %v2996_v36 = vpop.eup %2995 }
 0x4a2   : > { %2230 = vbcast.lane.b32.xlu1 %v3857_v60, 336  ;;  %1764 = vrot.lane.b32.xlu0 %v2988_v59, %s3292_s14  ;;  %v1512_v60 = vmul.f32 1.442695, %v1486_v15  ;;  %v1232_v59 = vcombine.high %v3987_v55, %v3987_v55  ;;  %v1349_v55 = vrot.slane %v4000_v62, %v3720_v44 }
 0x4a4   : > { %v2998_v14 = vpop.eup %2997  ;;  %3003 = vpow2.f32 %v1512_v60 }
 0x4a5   : > { %3005 = vpow2.f32 %v1516_v16 }
 0x4a6   : > { %1742 = vrot.lane.b32.xlu1 %v2990_v13, %s3292_s14  ;;  %1768 = vrot.lane.b32.xlu0 %v2992_v40, %s3292_s14  ;;  %3007 = vpow2.f32 %v1520_v4  ;;  %v4092_v40 = vrot.slane %v1232_v59, %v3720_v44 }
 0x4a8   : > { %v3000_v33 = vpop.eup %2999 }
 0x4a9   : > { %v3002_v18 = vpop.eup %3001 }
 0x4aa   : > { %1746 = vrot.lane.b32.xlu1 %v2994_v9, %s3292_s14  ;;  %1772 = vrot.lane.b32.xlu0 %v2996_v36, %s3292_s14 }
 0x4ae   : > { %1750 = vrot.lane.b32.xlu1 %v2998_v14, %s3292_s14  ;;  %v3004_v8 = vpop.eup %3003 }
 0x4af   : > { %v3006_v9 = vpop.eup %3005 }
 0x4b0   : > { %v1245_v63 = vpop.permute.xlu0 %1244  ;;  %v4062_v34 = vpop.permute.xlu1 %1240 }
 0x4b1   : > { %v4065_v45 = vmul.f32 %v4059_v26, %v1245_v63  ;;  %v3008_v14 = vpop.eup %3007  ;;  %v1353_v63 = vrot.slane %v4010_v19, %v3720_v44 }
 0x4b2   : > { %1758 = vrot.lane.b32.xlu1 %v3000_v33, %s3292_s14  ;;  %v1231_v33 = vcombine.high %v4000_v62, %v4000_v62 }
 0x4b4   : > { %v1257_v17 = vpop.permute.xlu0 %1256  ;;  %v4074_v12 = vpop.permute.xlu1 %1252  ;;  %v1357_v59 = vrot.slane %v1231_v33, %v3720_v44 }
 0x4b5   : > { %v4077_v10 = vmul.f32 %v4070_v6, %v1257_v17 }
 0x4b6   : > { %1754 = vrot.lane.b32.xlu1 %v3002_v18, %s3292_s14 }
 0x4b8   : > { %v1269_v23 = vpop.permute.xlu0 %1268  ;;  %v4085_v41 = vpop.permute.xlu1 %1264 }
 0x4b9   : > { %v4088_v13 = vmul.f32 %v4081_v24, %v1269_v23  ;;  %v1233_v23 = vcombine.high %v4010_v19, %v4010_v19 }
 0x4ba   : > { %1762 = vrot.lane.b32.xlu1 %v3004_v8, %s3292_s14 }
 0x4bc   : > { %v1281_v20 = vpop.permute.xlu0 %1280  ;;  %v4094_v15 = vpop.permute.xlu1 %1276 }
 0x4bd   : > { %v4097_v36 = vmul.f32 %v4092_v40, %v1281_v20 }
 0x4be   : > { %1766 = vrot.lane.b32.xlu1 %v3006_v9, %s3292_s14 }
 0x4c0   : > { %v1293_v60 = vpop.permute.xlu0 %1292  ;;  %v1289_v27 = vpop.permute.xlu1 %1288 }
 0x4c1   : > { %v4102_v16 = vmul.f32 %v1349_v55, %v1293_v60  ;;  %v4104_v21 = vmul.f32 %v1349_v55, %v1289_v27  ;;  %v1361_v60 = vrot.slane %v1233_v23, %v3720_v44 }
 0x4c2   : > { %1770 = vrot.lane.b32.xlu1 %v3008_v14, %s3292_s14 }
 0x4c4   : > { %v1305_v11 = vpop.permute.xlu0 %1304  ;;  %v1301_v4 = vpop.permute.xlu1 %1300 }
 0x4c5   : > { %v4111_v17 = vmul.f32 %v1353_v63, %v1305_v11  ;;  %v4113_v18 = vmul.f32 %v1353_v63, %v1301_v4  ;;  %v1673_v63 = vrot.slane %v4003_v52, %v3720_v44 }
 0x4c7   : > { %4569 = vst [vmem:[#allocation25_spill] sm:$0xff] %v4113_v18 }
 0x4c8   : > { %v1317_v8 = vpop.permute.xlu0 %1316  ;;  %v1313_v20 = vpop.permute.xlu1 %1312 }
 0x4c9   : > { %v4118_v9 = vmul.f32 %v1357_v59, %v1317_v8  ;;  %v4120_v55 = vmul.f32 %v1357_v59, %v1313_v20  ;;  %v1677_v8 = vrot.slane %v4015_v22, %v3720_v44 }
 0x4cb   : > { %4570 = vst [vmem:[#allocation26_spill] sm:$0xff] %v4118_v9  ;;  %4571 = vst [vmem:[#allocation27_spill] sm:$0xff] %v4120_v55  ;;  %v1160_v55 = vmul.f32 1.442695, %v3921_v38 }
 0x4cc   : > { %v1329_v62 = vpop.permute.xlu0 %1328  ;;  %v1325_v27 = vpop.permute.xlu1 %1324 }
 0x4cd   : > { %v4123_v14 = vmul.f32 %v1361_v60, %v1329_v62  ;;  %v4125_v11 = vmul.f32 %v1361_v60, %v1325_v27  ;;  %v1570_v60 = vcombine.high %v4003_v52, %v4003_v52 }
 0x4cf   : > { %4572 = vst [vmem:[#allocation28_spill] sm:$0xff] %v4123_v14  ;;  %4573 = vst [vmem:[#allocation29_spill] sm:$0xff] %v4125_v11 }
 0x4d0   : > { %v1581_v33 = vpop.permute.xlu1 %1580  ;;  %v1593_v19 = vpop.permute.xlu0 %1592 }
 0x4d1   : > { %v1710_v4 = vmul.f32 %v1673_v63, %v1581_v33  ;;  %v1712_v20 = vmul.f32 %v1677_v8, %v1593_v19  ;;  %v1681_v33 = vrot.slane %v1570_v60, %v3720_v44 }
 0x4d3   : > { %1838 = vrot.lane.b32.xlu1 %v1710_v4, %s3292_s14 }
 0x4d4   : > { %v1585_v59 = vpop.permute.xlu1 %1584  ;;  %v1633_v27 = vpop.permute.xlu0 %1632 }
 0x4d5   : > { %v1711_v23 = vmul.f32 %v1673_v63, %v1585_v59  ;;  %v1572_v63 = vcombine.high %v4015_v22, %v4015_v22 }
 0x4d7   : > { %1840 = vrot.lane.b32.xlu0 %v1711_v23, %s3292_s14  ;;  %1842 = vrot.lane.b32.xlu1 %v1712_v20, %s3292_s14  ;;  %v1685_v52 = vrot.slane %v1572_v63, %v3720_v44  ;;  %v1571_v63 = vcombine.high %v4018_v0, %v4018_v0 }
 0x4d8   : > { %v1597_v62 = vpop.permute.xlu1 %1596  ;;  %v1645_v4 = vpop.permute.xlu0 %1644 }
 0x4d9   : > { %v1713_v25 = vmul.f32 %v1677_v8, %v1597_v62 }
 0x4db   : > { %1844 = vrot.lane.b32.xlu0 %v1713_v25, %s3292_s14 }
 0x4dc   : > { %v1605_v11 = vpop.permute.xlu1 %1604  ;;  %v1657_v8 = vpop.permute.xlu0 %1656 }
 0x4dd   : > { %v1714_v14 = vmul.f32 %v1681_v33, %v1605_v11  ;;  %v1689_v11 = vrot.slane %v4018_v0, %v3720_v44 }
 0x4df   : > { %1846 = vrot.lane.b32.xlu1 %v1714_v14, %s3292_s14  ;;  %v1719_v62 = vmul.f32 %v1689_v11, %v1633_v27  ;;  %v1573_v27 = vcombine.high %v4025_v7, %v4025_v7 }
 0x4e0   : > { %v1609_v19 = vpop.permute.xlu1 %1608  ;;  %v1669_v14 = vpop.permute.xlu0 %1668 }
 0x4e1   : > { %v1715_v59 = vmul.f32 %v1681_v33, %v1609_v19  ;;  %v1693_v19 = vrot.slane %v4025_v7, %v3720_v44 }
 0x4e3   : > { %1848 = vrot.lane.b32.xlu0 %v1715_v59, %s3292_s14 }
 0x4e4   : > { %v1617_v20 = vpop.permute.xlu1 %1616 }
 0x4e5   : > { %v1716_v23 = vmul.f32 %v1685_v52, %v1617_v20  ;;  %v4153_v20 = vpop.permute.xlu0 %2186 }
 0x4e7   : > { %1850 = vrot.lane.b32.xlu1 %v1716_v23, %s3292_s14 }
 0x4e8   : > { %v1621_v25 = vpop.permute.xlu1 %1620 }
 0x4e9   : > { %v1717_v60 = vmul.f32 %v1685_v52, %v1621_v25  ;;  %v1721_v52 = vmul.f32 %v1693_v19, %v1645_v4  ;;  %v1697_v25 = vrot.slane %v1571_v63, %v3720_v44 }
 0x4eb   : > { %1852 = vrot.lane.b32.xlu0 %v1717_v60, %s3292_s14  ;;  %v1723_v0 = vmul.f32 %v1697_v25, %v1657_v8  ;;  %v2778_v8 = vmul.f32 -1.442695, %v3715_v42 }
 0x4ec   : > { %v1629_v22 = vpop.permute.xlu1 %1628 }
 0x4ed   : > { %v1718_v33 = vmul.f32 %v1689_v11, %v1629_v22  ;;  %v1701_v22 = vrot.slane %v1573_v27, %v3720_v44  ;;  %3009 = vpow2.f32 %v2778_v8  ;;  %v2950_v8 = vld [vmem:[%s3673_s8 + $0x8] sm:$0xff]  }
 0x4ef   : > { %1856 = vrot.lane.b32.xlu0 %v1719_v62, %s3292_s14  ;;  %1854 = vrot.lane.b32.xlu1 %v1718_v33, %s3292_s14  ;;  %v4161_v62 = vpop.permute.xlu0 %2194  ;;  %v1725_v33 = vmul.f32 %v1701_v22, %v1669_v14 }
 0x4f0   : > { %v1641_v59 = vpop.permute.xlu1 %1640 }
 0x4f1   : > { %v1720_v23 = vmul.f32 %v1693_v19, %v1641_v59 }
 0x4f3   : > { %1860 = vrot.lane.b32.xlu0 %v1721_v52, %s3292_s14  ;;  %1858 = vrot.lane.b32.xlu1 %v1720_v23, %s3292_s14  ;;  %v4169_v63 = vpop.permute.xlu0 %2202 }
 0x4f4   : > { %v1653_v60 = vpop.permute.xlu1 %1652 }
 0x4f5   : > { %v1722_v11 = vmul.f32 %v1697_v25, %v1653_v60 }
 0x4f7   : > { %1864 = vrot.lane.b32.xlu0 %v1723_v0, %s3292_s14  ;;  %1862 = vrot.lane.b32.xlu1 %v1722_v11, %s3292_s14  ;;  %v4176_v59 = vpop.permute.xlu0 %2210  ;;  %v3010_v25 = vpop.eup %3009 }
 0x4f8   : > { %v1665_v4 = vpop.permute.xlu1 %1664 }
 0x4f9   : > { %v1724_v19 = vmul.f32 %v1701_v22, %v1665_v4 }
 0x4fb   : > { %1868 = vrot.lane.b32.xlu0 %v1725_v33, %s3292_s14  ;;  %1866 = vrot.lane.b32.xlu1 %v1724_v19, %s3292_s14  ;;  %v4186_v23 = vpop.permute.xlu0 %2218 }
 0x4fc   : > { %v4167_v7 = vpop.permute.xlu1 %2182 }
 0x4ff   : > { %2242 = vbcast.lane.b32.xlu0 %v3872_v2, 344  ;;  %2238 = vbcast.lane.b32.xlu1 %v3872_v2, 336  ;;  %v4192_v27 = vpop.permute.xlu0 %2226 }
 0x500   : > { %v4174_v44 = vpop.permute.xlu1 %2190  ;;  %4574 = vst [vmem:[#allocation30_spill] sm:$0xff] %v4192_v27 }
 0x503   : > { %2034 = vbcast.lane.b32.xlu0 %v3754_v32, 344  ;;  %2030 = vbcast.lane.b32.xlu1 %v3754_v32, 336  ;;  %v2391_v32 = vadd.f32 1.0, %v3010_v25 }
 0x504   : > { %v4180_v14 = vpop.permute.xlu1 %2198 }
 0x505   : > { %3011 = vrcp.f32 %v2391_v32 }
 0x507   : > { %2042 = vbcast.lane.b32.xlu0 %v3766_v39, 344  ;;  %2038 = vbcast.lane.b32.xlu1 %v3766_v39, 336 }
 0x508   : > { %v4184_v52 = vpop.permute.xlu1 %2206 }
 0x50b   : > { %2050 = vbcast.lane.b32.xlu0 %v3771_v48, 344  ;;  %2046 = vbcast.lane.b32.xlu1 %v3771_v48, 336  ;;  %v4202_v48 = vpop.permute.xlu0 %2234 }
 0x50c   : > { %v4190_v2 = vpop.permute.xlu1 %2214  ;;  %4577 = vst [vmem:[#allocation33_spill] sm:$0xff] %v4202_v48 }
 0x50f   : > { %2058 = vbcast.lane.b32.xlu0 %v3776_v50, 344  ;;  %2054 = vbcast.lane.b32.xlu1 %v3776_v50, 336  ;;  %v1745_v50 = vpop.permute.xlu0 %1744  ;;  %v3012_v22 = vpop.eup %3011 }
 0x510   : > { %v4196_v60 = vpop.permute.xlu1 %2222 }
 0x511   : > { %4575 = vst [vmem:[#allocation31_spill] sm:$0xff] %v4196_v60 }
 0x513   : > { %2066 = vbcast.lane.b32.xlu0 %v3781_v53, 344  ;;  %2062 = vbcast.lane.b32.xlu1 %v3781_v53, 336  ;;  %v2397_v53 = vmul.f32 %v3012_v22, %v3715_v42  ;;  %v1749_v4 = vpop.permute.xlu0 %1748  ;;  %v1152_v42 = vmul.f32 1.442695, %v3907_v28 }
 0x514   : > { %v4200_v39 = vpop.permute.xlu1 %2230 }
 0x515   : > { %4576 = vst [vmem:[#allocation32_spill] sm:$0xff] %v4200_v39  ;;  %3013 = vpow2.f32 %v1152_v42  ;;  %v1156_v39 = vmul.f32 1.442695, %v3913_v31  ;;  %v1162_v42 = vmul.f32 1.442695, %v3924_v43 }
 0x517   : > { %2074 = vbcast.lane.b32.xlu0 %v3786_v58, 344  ;;  %2070 = vbcast.lane.b32.xlu1 %v3786_v58, 336  ;;  %v2949_v58 = vld [vmem:[%s3673_s8] sm:$0xff]   ;;  %v4213_v19 = vpop.permute.xlu0 %1752 }
 0x518   : > { %v1743_v0 = vpop.permute.xlu1 %1742  ;;  %2841 = vmatpush3.bf16.msra.mxu0 %v2949_v58  ;;  %v1154_v58 = vmul.f32 1.442695, %v3910_v29 }
 0x51a   : > { %3015 = vpow2.f32 %v1154_v58  ;;  %v1370_v58 = vmul.f32 %v4059_v26, %v4062_v34  ;;  %v1166_v34 = vmul.f32 1.442695, %v3930_v30  ;;  %v1168_v30 = vmul.f32 1.442695, %v3933_v51 }
 0x51b   : > { %2082 = vbcast.lane.b32.xlu0 %v3793_v61, 344  ;;  %2078 = vbcast.lane.b32.xlu1 %v3793_v61, 336  ;;  %v4578_v61 = vmov 0.0   ;;  %v4219_v32 = vpop.permute.xlu0 %1760  ;;  %3017 = vpow2.f32 %v1156_v39 }
 0x51c   : > { %v1747_v11 = vpop.permute.xlu1 %1746  ;;  %2842 = vmatprep.subr.bf16.mxu0 %v4578_v61 }
 0x51d   : > { %2843 = vmatpush3.bf16.msra.mxu0 %v2950_v8 }
 0x51e   : > { %2844 = vmatprep.subr.bf16.mxu0 %v4578_v61  ;;  %v1158_v61 = vmul.f32 1.442695, %v3918_v37  ;;  %v1164_v37 = vmul.f32 1.442695, %v3927_v47 }
 0x51f   : > { %2090 = vbcast.lane.b32.xlu0 %v3800_v3, 344  ;;  %2086 = vbcast.lane.b32.xlu1 %v3800_v3, 336  ;;  %v4225_v22 = vpop.permute.xlu0 %1756  ;;  %v3014_v9 = vpop.eup %3013 }
 0x520   : > { %v1751_v33 = vpop.permute.xlu1 %1750  ;;  %3019 = vpow2.f32 %v1158_v61  ;;  %v1790_v31 = vsel %vm849_vm7, %v3014_v9, %v1743_v0  ;;  %v1372_v9 = vmul.f32 %v4070_v6, %v4074_v12 }
 0x521   : > { %3021 = vpow2.f32 %v1160_v55  ;;  %v1920_v39 = vmul.f32 0.0, %v1790_v31 }
 0x522   : > { %3023 = vpow2.f32 %v1162_v42 }
 0x523   : > { %2401 = vrot.lane.b32.xlu0 %v2397_v53, %s3292_s14  ;;  %v4231_v48 = vpop.permute.xlu0 %1764  ;;  %3025 = vpow2.f32 %v1164_v37 }
 0x524   : > { %v4216_v25 = vpop.permute.xlu1 %1758  ;;  %v3016_v60 = vpop.eup %3015  ;;  %3027 = vpow2.f32 %v1166_v34 }
 0x525   : > { %v1791_v61 = vsel %vm849_vm7, %v3016_v60, %v1745_v50  ;;  %v3018_v43 = vpop.eup %3017  ;;  %3029 = vpow2.f32 %v1168_v30 }
 0x526   : > { %v1792_v26 = vsel %vm849_vm7, %v3018_v43, %v1747_v11  ;;  %v1921_v47 = vmul.f32 0.0, %v1791_v61 }
 0x527   : > { %v4237_v28 = vpop.permute.xlu0 %1768 }
 0x528   : > { %v4222_v3 = vpop.permute.xlu1 %1754 }
 0x52b   : > { %v4246_v38 = vpop.permute.xlu0 %1772 }
 0x52c   : > { %v4227_v53 = vpop.permute.xlu1 %1762 }
 0x530   : > { %v4233_v8 = vpop.permute.xlu1 %1766 }
 0x534   : > { %v4240_v29 = vpop.permute.xlu1 %1770 }
 0x535   : > { %4579 = vst [vmem:[#allocation34_spill] sm:$0xff] %v4240_v29  ;;  %v3020_v29 = vpop.eup %3019 }
 0x536   : > { %v3022_v50 = vpop.eup %3021 }
 0x537   : > { %v1794_v37 = vsel %vm849_vm7, %v3022_v50, %v1751_v33  ;;  %v3024_v51 = vpop.eup %3023 }
 0x545   : > { %v1839_v27 = vpop.permute.xlu1 %1838 }
 0x546   : > { %v1886_v55 = vsel %vm849_vm7, %v1370_v58, %v1839_v27  ;;  %v1793_v58 = vsel %vm849_vm7, %v3020_v29, %v1749_v4 }
 0x547   : > { %v4250_v18 = vadd.f32 %v1920_v39, %v1886_v55  ;;  %v1170_v55 = vmul.f32 1.442695, %v3936_v56  ;;  %v1795_v56 = vsel %vm849_vm7, %v3024_v51, %v4213_v19 }
 0x549   : > { %v1841_v0 = vpop.permute.xlu0 %1840  ;;  %v1931_v42 = vmul.f32 %v4250_v18, %v1792_v26  ;;  %v1843_v31 = vpop.permute.xlu1 %1842  ;;  %v2244_v6 = vmul.f32 %v4167_v7, %v4250_v18  ;;  %v1374_v26 = vmul.f32 %v4081_v24, %v4085_v41  ;;  %3031 = vpow2.f32 %v1170_v55 }
 0x54a   : > { %v1887_v27 = vsel %vm849_vm7, %v4065_v45, %v1841_v0  ;;  %v1888_v60 = vsel %vm849_vm7, %v1372_v9, %v1843_v31  ;;  %v3026_v41 = vpop.eup %3025 }
 0x54b   : > { %v4262_v12 = vadd.f32 %v1921_v47, %v1887_v27  ;;  %v4264_v11 = vadd.f32 %v1931_v42, %v1888_v60  ;;  %v2261_v4 = vsel %vm2260_vm12, %v2244_v6, 0.0  ;;  %v1172_v42 = vmul.f32 1.442695, %v3941_v54 }
 0x54c   : > { %v1176_v54 = vmul.f32 1.442695, %v3947_v1  ;;  %v1376_v1 = vmul.f32 %v4092_v40, %v4094_v15 }
 0x54d   : > { %v2245_v45 = vmul.f32 %v4153_v20, %v4262_v12  ;;  %v1932_v39 = vmul.f32 %v4262_v12, %v1793_v58  ;;  %v1845_v61 = vpop.permute.xlu0 %1844  ;;  %v1943_v7 = vmul.f32 %v4264_v11, %v1794_v37  ;;  %v2246_v29 = vmul.f32 %v4174_v44, %v4264_v11 }
 0x54e   : > { %v1889_v43 = vsel %vm849_vm7, %v4077_v10, %v1845_v61  ;;  %v1174_v20 = vmul.f32 1.442695, %v3944_v57  ;;  %v1178_v10 = vmul.f32 1.442695, %v3953_v49  ;;  %v1182_v57 = vmul.f32 1.442695, %v3959_v5 }
 0x54f   : > { %v2262_v33 = vsel %vm2260_vm12, %v2245_v45, 0.0  ;;  %v4280_v9 = vadd.f32 %v1932_v39, %v1889_v43  ;;  %v2270_v19 = vsel %vm2260_vm12, %v2246_v29, 0.0  ;;  %v3028_v45 = vpop.eup %3027  ;;  %v1180_v43 = vmul.f32 1.442695, %v3956_v35 }
 0x550   : > { %v2263_v34 = vadd.f32 %v2262_v33, %v2261_v4  ;;  %3033 = vpow2.f32 %v1174_v20  ;;  %v1797_v61 = vsel %vm849_vm7, %v3028_v45, %v4225_v22  ;;  %v3030_v40 = vpop.eup %3029 }
 0x551   : > { %v2247_v47 = vmul.f32 %v4161_v62, %v4280_v9  ;;  %v1847_v0 = vpop.permute.xlu1 %1846  ;;  %v1944_v44 = vmul.f32 %v4280_v9, %v1795_v56  ;;  %v1796_v62 = vsel %vm849_vm7, %v3026_v41, %v4222_v3  ;;  %3035 = vpow2.f32 %v1178_v10 }
 0x552   : > { %v2264_v31 = vrot.slane %v2263_v34, 4  ;;  %v1890_v24 = vsel %vm849_vm7, %v1374_v26, %v1847_v0  ;;  %3037 = vpow2.f32 %v1182_v57  ;;  %v1798_v35 = vsel %vm849_vm7, %v3030_v40, %v4216_v25 }
 0x553   : > { %v2271_v27 = vsel %vm2260_vm12, %v2247_v47, 0.0  ;;  %v4296_v49 = vadd.f32 %v1943_v7, %v1890_v24  ;;  %3039 = vpow2.f32 %v1172_v42 }
 0x554   : > { %v2265_v60 = vadd.f32 %v2264_v31, %v2263_v34  ;;  %v2272_v50 = vadd.f32 %v2271_v27, %v2270_v19  ;;  %3041 = vpow2.f32 %v1176_v54  ;;  %v3032_v34 = vpop.eup %3031 }
 0x555   : > { %v1849_v5 = vpop.permute.xlu0 %1848  ;;  %v1955_v6 = vmul.f32 %v4296_v49, %v1796_v62  ;;  %v2248_v39 = vmul.f32 %v4180_v14, %v4296_v49  ;;  %v2779_v14 = vmul.f32 -1.442695, %v3725_v46  ;;  %3043 = vpow2.f32 %v1180_v43 }
 0x556   : > { %v2266_v30 = vrot.slane %v2265_v60, 2  ;;  %v2273_v58 = vrot.slane %v2272_v50, 4  ;;  %v1891_v37 = vsel %vm849_vm7, %v4088_v13, %v1849_v5  ;;  %v1799_v24 = vsel %vm849_vm7, %v3032_v34, %v4219_v32 }
 0x557   : > { %v4306_v3 = vadd.f32 %v1944_v44, %v1891_v37  ;;  %v2279_v15 = vsel %vm2260_vm12, %v2248_v39, 0.0  ;;  %3045 = vpow2.f32 %v2779_v14 }
 0x558   : > { %v2267_v7 = vadd.f32 %v2266_v30, %v2265_v60  ;;  %v2274_v55 = vadd.f32 %v2273_v58, %v2272_v50 }
 0x559   : > { %v2249_v13 = vmul.f32 %v4169_v63, %v4306_v3  ;;  %v1851_v51 = vpop.permute.xlu1 %1850  ;;  %v1956_v4 = vmul.f32 %v4306_v3, %v1797_v61 }
 0x55a   : > { %v2275_v33 = vrot.slane %v2274_v55, 2  ;;  %v1892_v29 = vsel %vm849_vm7, %v1376_v1, %v1851_v51  ;;  %v2268_v26 = vrot.slane %v2267_v7, 1  ;;  %v3034_v0 = vpop.eup %3033 }
 0x55b   : > { %v2280_v22 = vsel %vm2260_vm12, %v2249_v13, 0.0  ;;  %v4320_v20 = vadd.f32 %v1955_v6, %v1892_v29  ;;  %v3036_v31 = vpop.eup %3035  ;;  %v1801_v27 = vsel %vm849_vm7, %v3034_v0, %v4231_v48 }
 0x55c   : > { %v2276_v63 = vadd.f32 %v2275_v33, %v2274_v55  ;;  %v2281_v56 = vadd.f32 %v2280_v22, %v2279_v15  ;;  %v3038_v19 = vpop.eup %3037  ;;  %v2269_v62 = vadd.f32 %v2268_v26, %v2267_v7 }
 0x55d   : > { %v1853_v10 = vpop.permute.xlu0 %1852  ;;  %v1967_v47 = vmul.f32 %v4320_v20, %v1798_v35  ;;  %v2250_v25 = vmul.f32 %v4184_v52, %v4320_v20  ;;  %v3040_v54 = vpop.eup %3039  ;;  %v1805_v32 = vsel %vm849_vm7, %v3038_v19, %v4246_v38 }
 0x55e   : > { %v2277_v44 = vrot.slane %v2276_v63, 1  ;;  %v2282_v42 = vrot.slane %v2281_v56, 4  ;;  %v1893_v57 = vsel %vm849_vm7, %v4097_v36, %v1853_v10  ;;  %v1803_v36 = vsel %vm849_vm7, %v3036_v31, %v4237_v28  ;;  %v3042_v45 = vpop.eup %3041 }
 0x55f   : > { %v4331_v41 = vadd.f32 %v1956_v4, %v1893_v57  ;;  %v2288_v38 = vsel %vm2260_vm12, %v2250_v25, 0.0  ;;  %v1800_v61 = vsel %vm849_vm7, %v3040_v54, %v4227_v53  ;;  %v3044_v15 = vpop.eup %3043 }
 0x560   : > { %v2278_v60 = vadd.f32 %v2277_v44, %v2276_v63  ;;  %v2283_v50 = vadd.f32 %v2282_v42, %v2281_v56  ;;  %v4581_v63 = vld [vmem:[#allocation34_spill] sm:$0xff]  ;;  %v4583_v44 = vld [vmem:[#allocation31_spill] sm:$0xff] }
 0x561   : > { %v2251_v52 = vmul.f32 %v4176_v59, %v4331_v41  ;;  %v1968_v5 = vmul.f32 %v4331_v41, %v1799_v24  ;;  %v1857_v6 = vpop.permute.xlu0 %1856  ;;  %v1855_v30 = vpop.permute.xlu1 %1854  ;;  %v1804_v56 = vsel %vm849_vm7, %v3044_v15, %v4581_v63 }
 0x562   : > { %v2284_v58 = vrot.slane %v2283_v50, 2  ;;  %v1895_v48 = vsel %vm849_vm7, %v4102_v16, %v1857_v6  ;;  %v1894_v37 = vsel %vm849_vm7, %v4104_v21, %v1855_v30  ;;  %v2364_v28 = vsel %vm2341_vm13, %v2278_v60, %v2269_v62  ;;  %v3046_v26 = vpop.eup %3045  ;;  %v4584_v62 = vld [vmem:[#allocation26_spill] sm:$0xff] }
 0x563   : > { %v2289_v39 = vsel %vm2260_vm12, %v2251_v52, 0.0  ;;  %v4349_v59 = vadd.f32 %v1968_v5, %v1895_v48  ;;  %v4351_v1 = vadd.f32 %v1967_v47, %v1894_v37  ;;  %v1802_v16 = vsel %vm849_vm7, %v3042_v45, %v4233_v8  ;;  %v4580_v8 = vld [vmem:[#allocation25_spill] sm:$0xff] }
 0x564   : > { %v2285_v7 = vadd.f32 %v2284_v58, %v2283_v50  ;;  %v2290_v55 = vadd.f32 %v2289_v39, %v2288_v38  ;;  %v4585_v50 = vld [vmem:[#allocation27_spill] sm:$0xff]  ;;  %v4586_v45 = vld [vmem:[#allocation33_spill] sm:$0xff]  ;;  %v4587_v39 = vld [vmem:[#allocation32_spill] sm:$0xff] }
 0x565   : > { %v2253_v21 = vmul.f32 %v4186_v23, %v4349_v59  ;;  %v2252_v43 = vmul.f32 %v4190_v2, %v4351_v1  ;;  %v1980_v13 = vmul.f32 %v4349_v59, %v1801_v27  ;;  %v1861_v51 = vpop.permute.xlu0 %1860  ;;  %v1979_v4 = vmul.f32 %v4351_v1, %v1800_v61  ;;  %v1859_v14 = vpop.permute.xlu1 %1858 }
 0x566   : > { %v2286_v33 = vrot.slane %v2285_v7, 1  ;;  %v2291_v29 = vrot.slane %v2290_v55, 4  ;;  %v1897_v53 = vsel %vm849_vm7, %v4111_v17, %v1861_v51  ;;  %v1896_v40 = vsel %vm849_vm7, %v4580_v8, %v1859_v14  ;;  %v4582_v17 = vld [vmem:[#allocation30_spill] sm:$0xff] }
 0x567   : > { %v2298_v23 = vsel %vm2260_vm12, %v2253_v21, 0.0  ;;  %v2297_v22 = vsel %vm2260_vm12, %v2252_v43, 0.0  ;;  %v4369_v2 = vadd.f32 %v1980_v13, %v1897_v53  ;;  %v4371_v35 = vadd.f32 %v1979_v4, %v1896_v40  ;;  %v4588_v4 = vld [vmem:[#allocation28_spill] sm:$0xff] }
 0x568   : > { %v2287_v34 = vadd.f32 %v2286_v33, %v2285_v7  ;;  %v2292_v10 = vadd.f32 %v2291_v29, %v2290_v55  ;;  %v2299_v47 = vadd.f32 %v2298_v23, %v2297_v22  ;;  %v4589_v29 = vld [vmem:[#allocation29_spill] sm:$0xff] }
 0x569   : > { %v2255_v0 = vmul.f32 %v4582_v17, %v4369_v2  ;;  %v2254_v42 = vmul.f32 %v4583_v44, %v4371_v35  ;;  %v1992_v57 = vmul.f32 %v4369_v2, %v1803_v36  ;;  %v1865_v31 = vpop.permute.xlu0 %1864  ;;  %v1991_v24 = vmul.f32 %v4371_v35, %v1802_v16  ;;  %v1863_v25 = vpop.permute.xlu1 %1862 }
 0x56a   : > { %v2293_v19 = vrot.slane %v2292_v10, 2  ;;  %v2300_v27 = vrot.slane %v2299_v47, 4  ;;  %v1899_v60 = vsel %vm849_vm7, %v4584_v62, %v1865_v31  ;;  %v1898_v54 = vsel %vm849_vm7, %v4585_v50, %v1863_v25 }
 0x56b   : > { %v2307_v52 = vsel %vm2260_vm12, %v2255_v0, 0.0  ;;  %v2306_v5 = vsel %vm2260_vm12, %v2254_v42, 0.0  ;;  %v4387_v6 = vadd.f32 %v1992_v57, %v1899_v60  ;;  %v4389_v30 = vadd.f32 %v1991_v24, %v1898_v54 }
 0x56c   : > { %v2294_v36 = vadd.f32 %v2293_v19, %v2292_v10  ;;  %v2301_v58 = vadd.f32 %v2300_v27, %v2299_v47  ;;  %v2308_v48 = vadd.f32 %v2307_v52, %v2306_v5  ;;  %v2365_v37 = vsel %vm2343_vm14, %v2287_v34, %v2364_v28 }
 0x56d   : > { %v2257_v38 = vmul.f32 %v4586_v45, %v4387_v6  ;;  %v2256_v61 = vmul.f32 %v4587_v39, %v4389_v30  ;;  %v1869_v16 = vpop.permute.xlu0 %1868  ;;  %v1867_v7 = vpop.permute.xlu1 %1866  ;;  %v2004_v55 = vmul.f32 %v4387_v6, %v1805_v32  ;;  %v2003_v21 = vmul.f32 %v4389_v30, %v1804_v56  ;;  %v2951_v45 = vld [vmem:[%s3673_s8 + $0x10] sm:$0xff]  }
 0x56e   : > { %v2295_v43 = vrot.slane %v2294_v36, 1  ;;  %v2302_v13 = vrot.slane %v2301_v58, 2  ;;  %v2309_v51 = vrot.slane %v2308_v48, 4  ;;  %v1901_v14 = vsel %vm849_vm7, %v4588_v4, %v1869_v16  ;;  %2845 = vmatpush3.bf16.msra.mxu0 %v2951_v45 }
 0x56f   : > { %v2316_v28 = vsel %vm2260_vm12, %v2257_v38, 0.0  ;;  %v2315_v33 = vsel %vm2260_vm12, %v2256_v61, 0.0  ;;  %v1900_v53 = vsel %vm849_vm7, %v4589_v29, %v1867_v7  ;;  %v4404_v8 = vadd.f32 %v2004_v55, %v1901_v14 }
 0x570   : > { %v2296_v40 = vadd.f32 %v2295_v43, %v2294_v36  ;;  %v2303_v15 = vadd.f32 %v2302_v13, %v2301_v58  ;;  %v2310_v32 = vadd.f32 %v2309_v51, %v2308_v48  ;;  %v2317_v23 = vadd.f32 %v2316_v28, %v2315_v33 }
 0x571   : > { %v2243_v22 = vpop.permute.xlu0 %2242  ;;  %v4406_v63 = vadd.f32 %v2003_v21, %v1900_v53  ;;  %v2239_v56 = vpop.permute.xlu1 %2238  ;;  %v2392_v25 = vadd.f32 1.0, %v3046_v26  ;;  %v4590_v13 = vmov 0.0  }
 0x572   : > { %v2304_v34 = vrot.slane %v2303_v15, 1  ;;  %v2311_v10 = vrot.slane %v2310_v32, 2  ;;  %v2318_v47 = vrot.slane %v2317_v23, 4  ;;  %v2259_v17 = vmul.f32 %v2243_v22, %v4404_v8  ;;  %2846 = vmatprep.subr.bf16.mxu0 %v4590_v13 }
 0x573   : > { %v2258_v0 = vmul.f32 %v2239_v56, %v4406_v63  ;;  %v2366_v44 = vsel %vm2345_vm15, %v2296_v40, %v2365_v37  ;;  %3047 = vrcp.f32 %v2392_v25 }
 0x574   : > { %v2312_v42 = vadd.f32 %v2311_v10, %v2310_v32  ;;  %v2319_v57 = vadd.f32 %v2318_v47, %v2317_v23  ;;  %v2325_v31 = vsel %vm2260_vm12, %v2259_v17, 0.0  ;;  %v2305_v24 = vadd.f32 %v2304_v34, %v2303_v15  ;;  %v2952_v32 = vld [vmem:[%s3673_s8 + $0x18] sm:$0xff]   ;;  %s4591_s8 = scalar_lea.vmem [#allocation13], %s3625_s23 }
 0x575   : > { %v2324_v19 = vsel %vm2260_vm12, %v2258_v0, 0.0  ;;  %v2035_v27 = vpop.permute.xlu0 %2034  ;;  %v2031_v62 = vpop.permute.xlu1 %2030  ;;  %2847 = vmatpush3.bf16.msra.mxu0 %v2952_v32 }
 0x576   : > { %v2326_v60 = vadd.f32 %v2325_v31, %v2324_v19  ;;  %v2093_v50 = vmul.f32 %v2035_v27, %v4262_v12  ;;  %v2092_v54 = vmul.f32 %v2031_v62, %v4250_v18  ;;  %v2313_v52 = vrot.slane %v2312_v42, 1 }
 0x577   : > { %v2320_v5 = vrot.slane %v2319_v57, 2  ;;  %v2367_v36 = vsel %vm2347_vm0, %v2305_v24, %v2366_v44 }
 0x578   : > { %v2327_v58 = vrot.slane %v2326_v60, 4  ;;  %v2109_v48 = vsel %vm849_vm7, %v2093_v50, 0.0  ;;  %v2108_v37 = vsel %vm849_vm7, %v2092_v54, 0.0  ;;  %v2314_v26 = vadd.f32 %v2313_v52, %v2312_v42 }
 0x579   : > { %v2110_v38 = vadd.f32 %v2109_v48, %v2108_v37  ;;  %v2043_v39 = vpop.permute.xlu0 %2042  ;;  %v2039_v61 = vpop.permute.xlu1 %2038  ;;  %v2321_v16 = vadd.f32 %v2320_v5, %v2319_v57 }
 0x57a   : > { %v2328_v12 = vadd.f32 %v2327_v58, %v2326_v60  ;;  %v2095_v18 = vmul.f32 %v2043_v39, %v4280_v9  ;;  %v2094_v7 = vmul.f32 %v2039_v61, %v4264_v11  ;;  %v2368_v55 = vsel %vm2349_vm1, %v2314_v26, %v2367_v36 }
 0x57b   : > { %v2111_v21 = vrot.slane %v2110_v38, 4  ;;  %v2322_v43 = vrot.slane %v2321_v16, 1 }
 0x57c   : > { %v2329_v51 = vrot.slane %v2328_v12, 2  ;;  %v2118_v4 = vsel %vm849_vm7, %v2095_v18, 0.0  ;;  %v2117_v14 = vsel %vm849_vm7, %v2094_v7, 0.0 }
 0x57d   : > { %v2112_v28 = vadd.f32 %v2111_v21, %v2110_v38  ;;  %v2119_v33 = vadd.f32 %v2118_v4, %v2117_v14  ;;  %v2051_v29 = vpop.permute.xlu0 %2050  ;;  %v2047_v9 = vpop.permute.xlu1 %2046  ;;  %v2323_v53 = vadd.f32 %v2322_v43, %v2321_v16 }
 0x57e   : > { %v2330_v11 = vadd.f32 %v2329_v51, %v2328_v12  ;;  %v2097_v40 = vmul.f32 %v2051_v29, %v4306_v3  ;;  %v2096_v15 = vmul.f32 %v2047_v9, %v4296_v49  ;;  %v3048_v24 = vpop.eup %3047 }
 0x57f   : > { %v2113_v23 = vrot.slane %v2112_v28, 2  ;;  %v2120_v22 = vrot.slane %v2119_v33, 4  ;;  %v2369_v56 = vsel %vm2351_vm2, %v2323_v53, %v2368_v55  ;;  %v2398_v48 = vmul.f32 %v3048_v24, %v3725_v46 }
 0x580   : > { %v2331_v34 = vrot.slane %v2330_v11, 1  ;;  %v2127_v10 = vsel %vm849_vm7, %v2097_v40, 0.0  ;;  %v2126_v47 = vsel %vm849_vm7, %v2096_v15, 0.0 }
 0x581   : > { %v2114_v17 = vadd.f32 %v2113_v23, %v2112_v28  ;;  %v2121_v0 = vadd.f32 %v2120_v22, %v2119_v33  ;;  %v2128_v44 = vadd.f32 %v2127_v10, %v2126_v47  ;;  %v2059_v42 = vpop.permute.xlu0 %2058  ;;  %v2055_v57 = vpop.permute.xlu1 %2054 }
 0x582   : > { %v2099_v3 = vmul.f32 %v2059_v42, %v4331_v41  ;;  %v2098_v49 = vmul.f32 %v2055_v57, %v4320_v20  ;;  %v2332_v31 = vadd.f32 %v2331_v34, %v2330_v11 }
 0x583   : > { %v2122_v25 = vrot.slane %v2121_v0, 2  ;;  %v2129_v19 = vrot.slane %v2128_v44, 4  ;;  %v2115_v27 = vrot.slane %v2114_v17, 1 }
 0x584   : > { %v2136_v62 = vsel %vm849_vm7, %v2099_v3, 0.0  ;;  %v2135_v60 = vsel %vm849_vm7, %v2098_v49, 0.0  ;;  %v2370_v50 = vsel %vm2353_vm3, %v2332_v31, %v2369_v56 }
 0x585   : > { %v2123_v54 = vadd.f32 %v2122_v25, %v2121_v0  ;;  %v2130_v52 = vadd.f32 %v2129_v19, %v2128_v44  ;;  %v2137_v5 = vadd.f32 %v2136_v62, %v2135_v60  ;;  %2371 = vrot.lane.b32.xlu1 %v2370_v50, %s3292_s14  ;;  %v2067_v36 = vpop.permute.xlu0 %2066  ;;  %v2063_v41 = vpop.permute.xlu1 %2062  ;;  %v2116_v38 = vadd.f32 %v2115_v27, %v2114_v17 }
 0x586   : > { %v2101_v20 = vmul.f32 %v2067_v36, %v4349_v59  ;;  %v2100_v58 = vmul.f32 %v2063_v41, %v4351_v1 }
 0x587   : > { %v2124_v37 = vrot.slane %v2123_v54, 1  ;;  %v2131_v26 = vrot.slane %v2130_v52, 2  ;;  %v2138_v45 = vrot.slane %v2137_v5, 4 }
 0x588   : > { %v2145_v39 = vsel %vm849_vm7, %v2101_v20, 0.0  ;;  %v2144_v61 = vsel %vm849_vm7, %v2100_v58, 0.0 }
 0x589   : > { %v2125_v16 = vadd.f32 %v2124_v37, %v2123_v54  ;;  %v2132_v12 = vadd.f32 %v2131_v26, %v2130_v52  ;;  %v2139_v18 = vadd.f32 %v2138_v45, %v2137_v5  ;;  %v2146_v7 = vadd.f32 %v2145_v39, %v2144_v61  ;;  %2403 = vrot.lane.b32.xlu1 %v2398_v48, %s3292_s14  ;;  %v2075_v55 = vpop.permute.xlu0 %2074  ;;  %v2071_v59 = vpop.permute.xlu1 %2070  ;;  %v2777_v39 = vld [vmem:[%s4591_s8] ss:$0 sm:$0xff]  ;;  %v4592_v61 = vld [vmem:[#allocation23_spill] sm:$0xff] }
 0x58a   : > { %v2103_v1 = vmul.f32 %v2075_v55, %v4369_v2  ;;  %v2102_v46 = vmul.f32 %v2071_v59, %v4371_v35 }
 0x58b   : > { %v2342_v21 = vsel %vm2341_vm13, %v2125_v16, %v2116_v38  ;;  %v2133_v43 = vrot.slane %v2132_v12, 1  ;;  %v2140_v13 = vrot.slane %v2139_v18, 2  ;;  %v2147_v51 = vrot.slane %v2146_v7, 4 }
 0x58c   : > { %v2154_v4 = vsel %vm849_vm7, %v2103_v1, 0.0  ;;  %v2153_v14 = vsel %vm849_vm7, %v2102_v46, 0.0  ;;  %v2381_v16 = vmul.f32 %v2777_v39, %v4592_v61 }
 0x58d   : > { %v2134_v28 = vadd.f32 %v2133_v43, %v2132_v12  ;;  %v2141_v33 = vadd.f32 %v2140_v13, %v2139_v18  ;;  %v2148_v29 = vadd.f32 %v2147_v51, %v2146_v7  ;;  %v2155_v9 = vadd.f32 %v2154_v4, %v2153_v14  ;;  %v2083_v53 = vpop.permute.xlu0 %2082  ;;  %v2079_v11 = vpop.permute.xlu1 %2078  ;;  %v4593_v7 = vld [vmem:[#allocation24_spill] sm:$0xff]  ;;  %v3049_v4 = vld [vmem:[#allocation2] sm:$0xff] }
 0x58e   : > { %v2105_v40 = vmul.f32 %v2083_v53, %v4387_v6  ;;  %v2104_v2 = vmul.f32 %v2079_v11, %v4389_v30  ;;  %v2382_v55 = vmul.f32 %v2777_v39, %v4593_v7  ;;  %v3051_v11 = vld [vmem:[%s4594_s0] sm:$0xff] (!%p2785_p6)  }
 0x58f   : > { %v2344_v35 = vsel %vm2343_vm14, %v2134_v28, %v2342_v21  ;;  %v2142_v15 = vrot.slane %v2141_v33, 1  ;;  %v2149_v32 = vrot.slane %v2148_v29, 2  ;;  %v2156_v23 = vrot.slane %v2155_v9, 4 }
 0x590   : > { %v2163_v22 = vsel %vm849_vm7, %v2105_v40, 0.0  ;;  %v2162_v56 = vsel %vm849_vm7, %v2104_v2, 0.0  ;;  %v3293_v40 = vmov (!%p2785_p6), 0.0   ;;  %v3052_v2 = vld [vmem:[%s4594_s0 + $0x8] sm:$0xff] (!%p2785_p6)  }
 0x591   : > { %v2143_v34 = vadd.f32 %v2142_v15, %v2141_v33  ;;  %v2150_v10 = vadd.f32 %v2149_v32, %v2148_v29  ;;  %v2157_v47 = vadd.f32 %v2156_v23, %v2155_v9  ;;  %v2164_v17 = vadd.f32 %v2163_v22, %v2162_v56  ;;  %v2091_v0 = vpop.permute.xlu0 %2090  ;;  %v2087_v44 = vpop.permute.xlu1 %2086  ;;  %v3050_v29 = vld [vmem:[#allocation2 + $0x8] sm:$0xff]  ;;  %2852 = vmatprep.subr.bf16.mxu0 (!%p2785_p6), %v3293_v40  ;;  %v2786_v23 = vld [vmem:[#allocation14] ss:$0 sm:$0xff] (!%p2785_p6) }
 0x592   : > { %v2107_v42 = vmul.f32 %v2091_v0, %v4404_v8  ;;  %v2106_v6 = vmul.f32 %v2087_v44, %v4406_v63 }
 0x593   : > { %v2151_v30 = vrot.slane %v2150_v10, 1  ;;  %v2158_v57 = vrot.slane %v2157_v47, 2  ;;  %v2165_v3 = vrot.slane %v2164_v17, 4  ;;  %v2346_v49 = vsel %vm2345_vm15, %v2143_v34, %v2344_v35 }
 0x594   : > { %v2172_v31 = vsel %vm849_vm7, %v2107_v42, 0.0  ;;  %v2171_v24 = vsel %vm849_vm7, %v2106_v6, 0.0 }
 0x595   : > { %v2152_v25 = vadd.f32 %v2151_v30, %v2150_v10  ;;  %v2159_v19 = vadd.f32 %v2158_v57, %v2157_v47  ;;  %v2166_v27 = vadd.f32 %v2165_v3, %v2164_v17  ;;  %v2173_v62 = vadd.f32 %v2172_v31, %v2171_v24  ;;  %v2402_v1 = vpop.permute.xlu0 %2401 }
 0x597   : > { %v2160_v60 = vrot.slane %v2159_v19, 1  ;;  %v2167_v50 = vrot.slane %v2166_v27, 2  ;;  %v2174_v54 = vrot.slane %v2173_v62, 4  ;;  %v2348_v8 = vsel %vm2347_vm0, %v2152_v25, %v2346_v49 }
 0x599   : > { %v2161_v63 = vadd.f32 %v2160_v60, %v2159_v19  ;;  %v2168_v52 = vadd.f32 %v2167_v50, %v2166_v27  ;;  %v2175_v5 = vadd.f32 %v2174_v54, %v2173_v62 }
 0x59b   : > { %v2169_v36 = vrot.slane %v2168_v52, 1  ;;  %v2176_v41 = vrot.slane %v2175_v5, 2  ;;  %v2350_v20 = vsel %vm2349_vm1, %v2161_v63, %v2348_v8 }
 0x59d   : > { %v2170_v58 = vadd.f32 %v2169_v36, %v2168_v52  ;;  %v2177_v48 = vadd.f32 %v2176_v41, %v2175_v5 }
 0x59f   : > { %v2178_v37 = vrot.slane %v2177_v48, 1  ;;  %v2352_v26 = vsel %vm2351_vm2, %v2170_v58, %v2350_v20 }
 0x5a1   : > { %v2179_v45 = vadd.f32 %v2178_v37, %v2177_v48 }
 0x5a3   : > { %v2354_v38 = vsel %vm2353_vm3, %v2179_v45, %v2352_v26 }
 0x5a4   : > { %v2383_v18 = vadd.f32 %v2381_v16, %v2354_v38 }
 0x5a6   : > { %v2407_v21 = vmul.f32 %v2402_v1, %v2383_v18 }
 0x5f7   : > { %v2372_v12 = vpop.permute.xlu1 %2371 }
 0x5f8   : > { %v2384_v59 = vadd.f32 %v2382_v55, %v2372_v12 }
 0x5fb   : > { %v2404_v46 = vpop.permute.xlu1 %2403 }
 0x5fc   : > { %v2408_v43 = vmul.f32 %v2404_v46, %v2384_v59 }
 0x5fe   : > { %v2417_v13 = vpack.c.bf16 %v2408_v43, %v2407_v21 }
 0x600   : > { %2849 = vmatmul.mubr.msk.bf16.vlgmr.msra.gmra.mrb[4].mxu0 %vm849_vm7, %v2417_v13 }
 0x601   : > { %2853 = vmatpush3.bf16.msra.mxu0 (!%p2785_p6), %v3051_v11  ;;  %2856 = vmatprep.mubr.msk.bf16.mxu0 (!%p2785_p6), %vm3294_vm4, %v3293_v40 }
 0x602   : > { %2854 = vmatprep.subr.bf16.mxu0 (!%p2785_p6), %v3293_v40 }
 0x605   : > { %2855 = vmatpush3.bf16.msra.mxu0 (!%p2785_p6), %v3052_v2 }
 0x6d2   : > { %2491 = sbr.rel (%p2785_p6) target bundleno = 1990 (0x7c6), region = 108 }
 0x6d3   : > { %v2479_v51 = vpop.f32.mrb[4].mxu0 }
 0x6d4   : > { %v2480_v14 = vadd.f32 %v3049_v4, %v2479_v51  ;;  %v2850_v28 = vpop.f32.mrb[5].mxu0 }
 0x6d5   : > { %v2482_v33 = vpop.f32.mrb[6].mxu0 }
 0x6d6   : > { %2486 = vst.msk [vmem:[#allocation2] sm:$0xff] %vm763_vm5, %v2480_v14  ;;  %v2483_v9 = vadd.f32 %v3050_v29, %v2482_v33  ;;  %v2851_v53 = vpop.f32.mrb[7].mxu0 }
 0x6d8   : > { %2487 = vst.msk [vmem:[#allocation2 + $0x8] sm:$0xff] %vm763_vm5, %v2483_v9 }
 0x6dd   : > { %v2492_v35 = vld [vmem:[#allocation2] sm:$0xff] }
 0x6df   : > { %v2493_v15 = vld [vmem:[#allocation2 + $0x8] sm:$0xff] }
 0x6e0   : > { %v2498_v32 = vpack.c.bf16 %v2493_v15, %v2492_v35 }
 0x6e2   : > { %2857 = vmatmul.mubr.msk.bf16.vlgmr.msra.gmra.mrb[0].mxu0 %vm763_vm5, %v2498_v32 }
 0x7b5   : > { %v2555_v22 = vpop.f32.mrb[0].mxu0 }
 0x7b6   : > { %v2556_v56 = vadd.f32 %v2786_v23, %v2555_v22  ;;  %v2858_v34 = vpop.f32.mrb[1].mxu0 }
 0x7b7   : > { %v2558_v10 = vpop.f32.mrb[2].mxu0 }
 0x7b8   : > { %3053 = vtanh.f32 %v2556_v56  ;;  %v2559_v47 = vadd.f32 %v2786_v23, %v2558_v10  ;;  %v2859_v17 = vpop.f32.mrb[3].mxu0 }
 0x7ba   : > { %3055 = vtanh.f32 %v2559_v47 }
 0x7c2   : > { %v3054_v0 = vpop.eup %3053 }
 0x7c3   : > { %2565 = vst.msk [vmem:[%s4595_s9] sm:$0xff] %vm2564_vm6, %v3054_v0 }
 0x7c4   : > { %v3056_v44 = vpop.eup %3055 }
 0x7c5   : > { %2566 = vst.msk [vmem:[%s4595_s9 + $0x8] sm:$0xff] %vm2564_vm6, %v3056_v44 }
 0x7c6 PF: > { %s4596_s16 = sld [smem:[#allocation21_spill]]  ;;  %s4597_s24 = sld [smem:[#allocation20_spill]] }
 0x7c7   : > { %s4598_s15 = sld [smem:[#allocation22_spill]]  ;;  %s4599_s29 = smov %s3271_s30 }
 0x7cc   : > { %p29_p7 = scmp.ge.s32.totalorder %s4596_s16, 4   ;;  %s4600_s30 = smov %s4597_s24 }
 0x7ce   :  { %31 = sbr.rel (!%p29_p7) target bundleno = 16 (0x10), region = 193 }
 0x7d5   :  { %2578 = vsyncpa [#allocation7], 1 }
 0x7d6   :  { %2580 = vsyncpa [#allocation7 + $0x1], 1 }
 0x7d7   :  { %2581 = vsyncpa [#allocation9], 1 }
 0x7d8   :  { %2583 = vsyncpa [#allocation9 + $0x1], 1 }
 0x7d9   :  { %2584 = vsyncpa [#allocation12], 1 }
 0x7da   :  { %2586 = vsyncpa [#allocation12 + $0x1], 1 }
 0x7db   :  { %2587 = vsyncpa [#allocation15], 1 }

</bundles_post_ra>
